<compile_context>
chip_gen: v5e
topology: v5e:2x2
jax: 0.10.0
libtpu: 0.0.40
codegen_flags: <defaults>
</compile_context>

<pallas_src>
import jax
import jax.numpy as jnp
from jax.experimental import pallas as pl
from jax.experimental.pallas import tpu as pltpu

# ---- problem sizes (small, consistent with the module) ----
B, T, C, H, W = 2, 4, 4, 16, 16
DILS = (1, 2, 4)              # the three dilated 3x3 branches ('same' padding)
H2, W2 = H // 2, W // 2       # after the 2x2 max-pool
F = C * H2 * W2               # flattened per-step feature fed to the LSTM (256)
N = B * T                     # number of (time, batch) samples (8)
HID = 32
OUT = 8
LANES = 4 * HID               # 128 (= gate width = lane width)
OUT_ROWS = 8                  # padded output sublanes

# ---- packed small-weight slab layout (all offsets 8-sublane aligned) ----
R_WCOMB = 0                    # (2F, 4*HID) fused [m2w; wih0]
R_BW    = R_WCOMB + 2 * F      # 512  (1 row used)
R_WHH0  = R_BW + 8             # 520  (HID rows)
R_WIH1  = R_WHH0 + HID         # 552
R_WHH1  = R_WIH1 + HID         # 584
R_BL1   = R_WHH1 + HID         # 616  (1 row used)
R_WA    = R_BL1 + 8            # 624  (1 row, HID cols used)
R_WFC   = R_WA + 8             # 632  (HID rows, OUT cols used, zero-padded)
R_BFC   = R_WFC + HID          # 664  (1 row, OUT cols used)
SLAB_ROWS = R_BFC + 8          # 672


# ------------------------------------------------------------------
# The fused kernel: dilated convs + pooling + residual + 2-layer LSTM
# + attention + FC.  grid=(4,) streams the folded conv-1 matrix over K.
# ------------------------------------------------------------------
def mva_dcn_kernel(x_ref, m1_ref, slab_ref, out_ref, acc_ref, resid_ref):
    f32 = jnp.float32
    k = pl.program_id(0)
    last = pl.num_programs(0) - 1

    xb = x_ref[...]                                          # (N, F) bf16, phase block k
    # partial product of the folded conv-1 matmul (native bf16 MXU, f32 acc)
    part = jnp.dot(xb, m1_ref[...], preferred_element_type=f32)   # (N, 4F)

    @pl.when(k == 0)
    def _():
        acc_ref[...] = jnp.zeros((N, 4 * F), f32)
        resid_ref[...] = jnp.full((N, F), -jnp.inf, f32)

    acc_ref[...] += part
    # 2x2 max-pool of the raw input == running max over the 4 phase blocks
    resid_ref[...] = jnp.maximum(resid_ref[...], xb.astype(f32))

    @pl.when(k == last)
    def _():
        y1 = acc_ref[...]                                    # (N, 4F) conv1 output
        # 2x2 max-pool == elementwise max of the four phase column blocks
        pooled = jnp.maximum(jnp.maximum(y1[:, 0:F], y1[:, F:2 * F]),
                             jnp.maximum(y1[:, 2 * F:3 * F], y1[:, 3 * F:4 * F]))
        resid = resid_ref[...]                               # (N, F) pooled input
        # TODO(synk): reference residual `+ x[:, i]` is shape-inconsistent after
        # the 2x2 pooling; as before we add the 2x2-max-pooled input instead.

        # packed small-weight slab slices (all 8-sublane aligned)
        wcomb = slab_ref[R_WCOMB:R_WCOMB + 2 * F, :]         # (2F, 4*HID)
        bw    = slab_ref[R_BW:R_BW + 1, :]
        whh0  = slab_ref[R_WHH0:R_WHH0 + HID, :]
        wih1  = slab_ref[R_WIH1:R_WIH1 + HID, :]
        whh1  = slab_ref[R_WHH1:R_WHH1 + HID, :]
        bl1   = slab_ref[R_BL1:R_BL1 + 1, :]
        wa    = slab_ref[R_WA:R_WA + 1, 0:HID]
        wfc   = slab_ref[R_WFC:R_WFC + HID, :]               # (HID, 128), cols>=OUT are 0
        bfc   = slab_ref[R_BFC:R_BFC + 1, :]

        # conv2 + residual + LSTM layer-0 input projection in a single matmul
        pr = jnp.concatenate([pooled, resid], axis=1)        # (N, 2F)
        g0 = jnp.dot(pr, wcomb, preferred_element_type=f32) + bw   # (N, 4*HID)

        # two-layer LSTM, layers interleaved per time step.
        # Gate order (i, f, g, o) along 4*HID, matching torch.nn.LSTM.
        def cell(gates, c):
            sg = jax.nn.sigmoid(gates)                       # one full-width EUP op
            i_g = sg[:, 0:HID]
            f_g = sg[:, HID:2 * HID]
            o_g = sg[:, 3 * HID:4 * HID]
            g_g = jnp.tanh(gates[:, 2 * HID:3 * HID])
            c_new = f_g * c + i_g * g_g
            return o_g * jnp.tanh(c_new), c_new

        h0 = jnp.zeros((B, HID), f32); c0 = jnp.zeros((B, HID), f32)
        h1 = jnp.zeros((B, HID), f32); c1 = jnp.zeros((B, HID), f32)
        hs1 = []
        for t in range(T):                                   # T=4, fully unrolled
            h0, c0 = cell(g0[t * B:(t + 1) * B, :] +
                          jnp.dot(h0, whh0, preferred_element_type=f32), c0)
            h1, c1 = cell(jnp.dot(h0, wih1, preferred_element_type=f32) + bl1 +
                          jnp.dot(h1, whh1, preferred_element_type=f32), c1)
            hs1.append(h1)

        # attention over time (softmax over T) + final FC
        # TODO(synk): the attention Linear's scalar bias is omitted; softmax is
        # invariant to a constant shift so the result is unchanged.
        sc = [jnp.sum(hs1[t] * wa, axis=1, keepdims=True) for t in range(T)]
        mx = sc[0]
        for t in range(1, T):
            mx = jnp.maximum(mx, sc[t])
        es = [jnp.exp(s - mx) for s in sc]
        den = es[0]
        for t in range(1, T):
            den = den + es[t]
        inv = 1.0 / den
        ctx = jnp.zeros((B, HID), f32)
        for t in range(T):
            ctx = ctx + (es[t] * inv) * hs1[t]               # (B, HID)

        # dense (8,128) output store (batch padded to 8 sublanes, lanes to 128)
        ctx_pad = jnp.concatenate(
            [ctx, jnp.zeros((OUT_ROWS - B, HID), f32)], axis=0)
        y = jnp.dot(ctx_pad, wfc, preferred_element_type=f32) + bfc
        out_ref[...] = y.astype(out_ref.dtype)


def mva_dcn_forward(x, fp):
    # x: (B, T, C, H, W) -> time-major rows, pooling phases separated into four
    # F-wide column blocks => lane-dense (N, 4F) kernel input (bf16 for the
    # native-MXU path; widened to f32 in-kernel for the pooling max).
    xt = jnp.transpose(x, (1, 0, 2, 3, 4)).reshape(N, C, H2, 2, W2, 2)
    xt = jnp.transpose(xt, (0, 3, 5, 1, 2, 4)).reshape(N, 4 * F)
    xt = xt.astype(jnp.bfloat16)

    kt = F                       # K tile == one pooling phase block
    k_tiles = (4 * F) // kt      # 4
    assert kt == F and k_tiles == 4

    grid_spec = pltpu.PrefetchScalarGridSpec(
        num_scalar_prefetch=0,
        grid=(k_tiles,),
        in_specs=[
            pl.BlockSpec((N, kt), lambda k: (0, k)),            # input phase block
            pl.BlockSpec((kt, 4 * F), lambda k: (k, 0)),        # m1p K stripe (bf16)
            pl.BlockSpec((SLAB_ROWS, LANES), lambda k: (0, 0)),  # packed small weights
        ],
        out_specs=pl.BlockSpec((OUT_ROWS, LANES), lambda k: (0, 0)),
        scratch_shapes=[
            pltpu.VMEM((N, 4 * F), jnp.float32),   # conv-1 matmul accumulator
            pltpu.VMEM((N, F), jnp.float32),       # running max of input phases
        ],
    )
    out = pl.pallas_call(
        mva_dcn_kernel,
        grid_spec=grid_spec,
        out_shape=jax.ShapeDtypeStruct((OUT_ROWS, LANES), jnp.float32),
        compiler_params=pltpu.CompilerParams(
            dimension_semantics=("arbitrary",)),
    )(xt, fp["m1p"], fp["slab"])
    return out[:B, :OUT]


# ------------------------------------------------------------------
# Parameters (deterministic synthetic init) and weight folding (wrapper-side,
# exact algebra in f32; the dominant matrix is then cast to bf16).
# ------------------------------------------------------------------
def init_params(key):
    ks = jax.random.split(key, 16)

    def nrm(k, shape, scale=0.1):
        return (scale * jax.random.normal(k, shape)).astype(jnp.float32)

    p = {}
    # DilatedConvNet 1 & 2: weights [dil, ky, kx, cin, cout], biases, merge scalars
    p["w1"] = nrm(ks[0], (3, 3, 3, C, C))
    p["b1"] = nrm(ks[1], (3, C))
    p["m1"] = nrm(ks[2], (3,))
    p["w2"] = nrm(ks[3], (3, 3, 3, C, C))
    p["b2"] = nrm(ks[4], (3, C))
    p["m2"] = nrm(ks[5], (3,))
    # 2-layer LSTM (gate order i, f, g, o along 4*HID; single fused bias per layer)
    p["wih0"] = nrm(ks[6], (F, 4 * HID))
    p["whh0"] = nrm(ks[7], (HID, 4 * HID))
    p["bl0"] = nrm(ks[8], (1, 4 * HID))
    p["wih1"] = nrm(ks[9], (HID, 4 * HID))
    p["whh1"] = nrm(ks[10], (HID, 4 * HID))
    p["bl1"] = nrm(ks[11], (1, 4 * HID))
    # attention + fc (attention scalar bias is a softmax-invariant shift -> dropped)
    p["wa"] = nrm(ks[12], (1, HID))
    p["wfc"] = nrm(ks[14], (HID, OUT))
    p["bfc"] = nrm(ks[15], (1, OUT))
    return p


def _shift_matrix(n, delta):
    i = jnp.arange(n)
    return (i[:, None] == i[None, :] + delta).astype(jnp.float32)   # [src, dst]


def _dilated_conv_matrix(w, m, hs, ws):
    """Dense matrix of a merged DilatedConvNet: out_flat = in_flat @ M.

    Flat layout: c*hs*ws + y*ws + x.  3x3 kernel, 'same' zero padding,
    dilations DILS, branch outputs merged with the learned scalars m.
    w: (3, 3, 3, C, C) indexed [dil, ky, kx, cin, cout]."""
    M = jnp.zeros((C * hs * ws, C * hs * ws), jnp.float32)
    for di, d in enumerate(DILS):
        for ky in range(3):
            sy = _shift_matrix(hs, d * (ky - 1))
            for kx in range(3):
                sx = _shift_matrix(ws, d * (kx - 1))
                M = M + jnp.kron(m[di] * w[di, ky, kx], jnp.kron(sy, sx))
    return M


def fold_params(p):
    """Fold conv weights, the pooling phase layout, the residual and the LSTM
    layer-0 input projection into MXU-ready matrices, and pack every small
    operand into one (8,128)-aligned f32 slab."""
    # conv1 on the 16x16 map, then permute both sides into the phase-separated
    # layout (a, b, c, yy, xx) used by the kernel.
    m1 = _dilated_conv_matrix(p["w1"], p["m1"], H, W)            # (4F, 4F)
    q = jnp.arange(4 * F)
    ph, r = q // F, q % F
    a, b = ph // 2, ph % 2
    c, yy, xx = r // (H2 * W2), (r % (H2 * W2)) // W2, r % W2
    perm = c * (H * W) + (2 * yy + a) * W + (2 * xx + b)
    m1p = m1[perm][:, perm]                                      # (4F, 4F)
    # conv2 on the pooled 8x8 map (compact layout c*64 + yy*8 + xx).
    m2c = _dilated_conv_matrix(p["w2"], p["m2"], H2, W2)         # (F, F)
    # Folding the conv-1 bias through the max-pool is exact ONLY because b1 is
    # per-channel and every pooled candidate shares its channel:
    # max(y + b) == max(y) + b.
    b1c = jnp.repeat((p["m1"][:, None] * p["b1"]).sum(0), H2 * W2)[None, :]
    b2c = jnp.repeat((p["m2"][:, None] * p["b2"]).sum(0), H2 * W2)[None, :]
    m2w = jnp.dot(m2c, p["wih0"])                                # (F, 4*HID)
    bw = jnp.dot(b1c, m2w) + jnp.dot(b2c, p["wih0"]) + p["bl0"]  # (1, 4*HID)
    wcomb = jnp.concatenate([m2w, p["wih0"]], axis=0)            # (2F, 4*HID)

    slab = jnp.zeros((SLAB_ROWS, LANES), jnp.float32)
    slab = slab.at[R_WCOMB:R_WCOMB + 2 * F, :].set(wcomb)
    slab = slab.at[R_BW, :].set(bw[0])
    slab = slab.at[R_WHH0:R_WHH0 + HID, :].set(p["whh0"])
    slab = slab.at[R_WIH1:R_WIH1 + HID, :].set(p["wih1"])
    slab = slab.at[R_WHH1:R_WHH1 + HID, :].set(p["whh1"])
    slab = slab.at[R_BL1, :].set(p["bl1"][0])
    slab = slab.at[R_WA, 0:HID].set(p["wa"][0])
    slab = slab.at[R_WFC:R_WFC + HID, 0:OUT].set(p["wfc"])
    slab = slab.at[R_BFC, 0:OUT].set(p["bfc"][0])

    # bf16 for the dominant HBM transfer / native-MXU matmul path (makes the
    # "exact" conv folding slightly approximate over the 1024-term contraction).
    return {"m1p": m1p.astype(jnp.bfloat16), "slab": slab}


if __name__ == "__main__":
    key = jax.random.PRNGKey(0)
    pkey, xkey = jax.random.split(key)
    params = init_params(pkey)
    folded = fold_params(params)
    x = jax.random.normal(xkey, (B, T, C, H, W), dtype=jnp.float32)

    out = mva_dcn_forward(x, folded)
    out = jax.block_until_ready(out)

    assert out.shape == (B, OUT), out.shape
    assert bool(jnp.all(jnp.isfinite(out)))
    print("KERNEL_OK")
</pallas_src>

<mosaic_0001>
module attributes {stable_mosaic.version = 11 : i64} {
  func.func @mva_dcn_kernel(%arg0: i32, %arg1: memref<8x256xbf16, #tpu.memory_space<vmem>>, %arg2: memref<256x1024xbf16, #tpu.memory_space<vmem>>, %arg3: memref<672x128xf32, #tpu.memory_space<vmem>>, %arg4: memref<8x128xf32, #tpu.memory_space<vmem>>, %arg5: memref<8x1024xf32, #tpu.memory_space<vmem>>, %arg6: memref<8x256xf32, #tpu.memory_space<vmem>>) attributes {dimension_semantics = [#tpu.dimension_semantics<arbitrary>], iteration_bounds = array<i64: 4>, scalar_prefetch = 0 : i64, scratch_operands = 2 : i64, tpu.core_type = #tpu.core_type<tc>, window_params = [{transform_indices = @transform_0, window_bounds = array<i64: 8, 256>}, {transform_indices = @transform_1, window_bounds = array<i64: 256, 1024>}, {pipeline_mode = #tpu.pipeline_mode<synchronous>, transform_indices = @transform_2, window_bounds = array<i64: 672, 128>}, {pipeline_mode = #tpu.pipeline_mode<synchronous>, transform_indices = @transform_3, window_bounds = array<i64: 8, 128>}]} {
    %c0 = arith.constant 0 : index
    %c0_0 = arith.constant 0 : index
    %0 = vector.load %arg1[%c0, %c0_0] : memref<8x256xbf16, #tpu.memory_space<vmem>>, vector<8x256xbf16>
    %c0_1 = arith.constant 0 : index
    %c0_2 = arith.constant 0 : index
    %1 = vector.load %arg2[%c0_1, %c0_2] : memref<256x1024xbf16, #tpu.memory_space<vmem>>, vector<256x1024xbf16>
    %cst = arith.constant dense<0.000000e+00> : vector<8x1024xf32>
    %2 = tpu.matmul %0, %1, %cst {dimension_numbers = #tpu.dot_dimension_numbers<[1], [0], [0], [1], [0, 0, 1, 1], [], []>} : vector<8x256xbf16>, vector<256x1024xbf16>, vector<8x1024xf32> -> vector<8x1024xf32>
    %c0_i32 = arith.constant 0 : i32
    %3 = arith.cmpi eq, %arg0, %c0_i32 : i32
    %4 = arith.extui %3 : i1 to i32
    %c0_i32_3 = arith.constant 0 : i32
    %5 = arith.cmpi ne, %4, %c0_i32_3 : i32
    scf.if %5 {
      %cst_13 = arith.constant 0.000000e+00 : f32
      %16 = vector.broadcast %cst_13 : f32 to vector<8x1024xf32>
      %c0_14 = arith.constant 0 : index
      %c0_15 = arith.constant 0 : index
      %17 = vector.load %arg5[%c0_14, %c0_15] : memref<8x1024xf32, #tpu.memory_space<vmem>>, vector<8x1024xf32>
      tpu.vector_store %arg5[%c0_14, %c0_15], %16 {strides = array<i32>} : memref<8x1024xf32, #tpu.memory_space<vmem>>, vector<8x1024xf32>,
      %cst_16 = arith.constant 0xFF800000 : f32
      %18 = vector.broadcast %cst_16 : f32 to vector<8x256xf32>
      %c0_17 = arith.constant 0 : index
      %c0_18 = arith.constant 0 : index
      %19 = vector.load %arg6[%c0_17, %c0_18] : memref<8x256xf32, #tpu.memory_space<vmem>>, vector<8x256xf32>
      tpu.vector_store %arg6[%c0_17, %c0_18], %18 {strides = array<i32>} : memref<8x256xf32, #tpu.memory_space<vmem>>, vector<8x256xf32>,
    } else {
    }
    %c0_4 = arith.constant 0 : index
    %c0_5 = arith.constant 0 : index
    %6 = vector.load %arg5[%c0_4, %c0_5] : memref<8x1024xf32, #tpu.memory_space<vmem>>, vector<8x1024xf32>
    %7 = arith.addf %6, %2 : vector<8x1024xf32>
    %c0_6 = arith.constant 0 : index
    %c0_7 = arith.constant 0 : index
    %8 = vector.load %arg5[%c0_6, %c0_7] : memref<8x1024xf32, #tpu.memory_space<vmem>>, vector<8x1024xf32>
    tpu.vector_store %arg5[%c0_6, %c0_7], %7 {strides = array<i32>} : memref<8x1024xf32, #tpu.memory_space<vmem>>, vector<8x1024xf32>,
    %c0_8 = arith.constant 0 : index
    %c0_9 = arith.constant 0 : index
    %9 = vector.load %arg6[%c0_8, %c0_9] : memref<8x256xf32, #tpu.memory_space<vmem>>, vector<8x256xf32>
    %10 = arith.extf %0 : vector<8x256xbf16> to vector<8x256xf32>
    %11 = arith.maximumf %9, %10 : vector<8x256xf32>
    %c0_10 = arith.constant 0 : index
    %c0_11 = arith.constant 0 : index
    %12 = vector.load %arg6[%c0_10, %c0_11] : memref<8x256xf32, #tpu.memory_space<vmem>>, vector<8x256xf32>
    tpu.vector_store %arg6[%c0_10, %c0_11], %11 {strides = array<i32>} : memref<8x256xf32, #tpu.memory_space<vmem>>, vector<8x256xf32>,
    %c3_i32 = arith.constant 3 : i32
    %13 = arith.cmpi eq, %arg0, %c3_i32 : i32
    %14 = arith.extui %13 : i1 to i32
    %c0_i32_12 = arith.constant 0 : i32
    %15 = arith.cmpi ne, %14, %c0_i32_12 : i32
    scf.if %15 {
      %c0_13 = arith.constant 0 : index
      %c0_14 = arith.constant 0 : index
      %16 = vector.load %arg5[%c0_13, %c0_14] : memref<8x1024xf32, #tpu.memory_space<vmem>>, vector<8x1024xf32>
      %17 = vector.extract_strided_slice %16 {offsets = [0, 0], sizes = [8, 256], strides = [1, 1]} : vector<8x1024xf32> to vector<8x256xf32>
      %18 = vector.extract_strided_slice %16 {offsets = [0, 256], sizes = [8, 256], strides = [1, 1]} : vector<8x1024xf32> to vector<8x256xf32>
      %19 = arith.maximumf %17, %18 : vector<8x256xf32>
      %20 = vector.extract_strided_slice %16 {offsets = [0, 512], sizes = [8, 256], strides = [1, 1]} : vector<8x1024xf32> to vector<8x256xf32>
      %21 = vector.extract_strided_slice %16 {offsets = [0, 768], sizes = [8, 256], strides = [1, 1]} : vector<8x1024xf32> to vector<8x256xf32>
      %22 = arith.maximumf %20, %21 : vector<8x256xf32>
      %23 = arith.maximumf %19, %22 : vector<8x256xf32>
      %c0_15 = arith.constant 0 : index
      %c0_16 = arith.constant 0 : index
      %24 = vector.load %arg6[%c0_15, %c0_16] : memref<8x256xf32, #tpu.memory_space<vmem>>, vector<8x256xf32>
      %c0_17 = arith.constant 0 : index
      %c0_18 = arith.constant 0 : index
      %25 = vector.load %arg3[%c0_17, %c0_18] : memref<672x128xf32, #tpu.memory_space<vmem>>, vector<512x128xf32>
      %c512 = arith.constant 512 : index
      %c0_19 = arith.constant 0 : index
      %26 = vector.load %arg3[%c512, %c0_19] : memref<672x128xf32, #tpu.memory_space<vmem>>, vector<1x128xf32>
      %c520 = arith.constant 520 : index
      %c0_20 = arith.constant 0 : index
      %27 = vector.load %arg3[%c520, %c0_20] : memref<672x128xf32, #tpu.memory_space<vmem>>, vector<32x128xf32>
      %c552 = arith.constant 552 : index
      %c0_21 = arith.constant 0 : index
      %28 = vector.load %arg3[%c552, %c0_21] : memref<672x128xf32, #tpu.memory_space<vmem>>, vector<32x128xf32>
      %c584 = arith.constant 584 : index
      %c0_22 = arith.constant 0 : index
      %29 = vector.load %arg3[%c584, %c0_22] : memref<672x128xf32, #tpu.memory_space<vmem>>, vector<32x128xf32>
      %c616 = arith.constant 616 : index
      %c0_23 = arith.constant 0 : index
      %30 = vector.load %arg3[%c616, %c0_23] : memref<672x128xf32, #tpu.memory_space<vmem>>, vector<1x128xf32>
      %c624 = arith.constant 624 : index
      %c0_24 = arith.constant 0 : index
      %31 = vector.load %arg3[%c624, %c0_24] : memref<672x128xf32, #tpu.memory_space<vmem>>, vector<1x32xf32>
      %c632 = arith.constant 632 : index
      %c0_25 = arith.constant 0 : index
      %32 = vector.load %arg3[%c632, %c0_25] : memref<672x128xf32, #tpu.memory_space<vmem>>, vector<32x128xf32>
      %c664 = arith.constant 664 : index
      %c0_26 = arith.constant 0 : index
      %33 = vector.load %arg3[%c664, %c0_26] : memref<672x128xf32, #tpu.memory_space<vmem>>, vector<1x128xf32>
      %34 = tpu.concatenate %23, %24 in 1 : vector<8x256xf32>, vector<8x256xf32> -> vector<8x512xf32>
      %cst_27 = arith.constant dense<0.000000e+00> : vector<8x128xf32>
      %35 = tpu.matmul %34, %25, %cst_27 {dimension_numbers = #tpu.dot_dimension_numbers<[1], [0], [0], [1], [0, 0, 1, 1], [], []>} : vector<8x512xf32>, vector<512x128xf32>, vector<8x128xf32> -> vector<8x128xf32>
      %36 = vector.broadcast %26 : vector<1x128xf32> to vector<8x128xf32>
      %37 = arith.addf %35, %36 : vector<8x128xf32>
      %cst_28 = arith.constant 0.000000e+00 : f32
      %38 = vector.broadcast %cst_28 : f32 to vector<2x32xf32>
      %cst_29 = arith.constant 0.000000e+00 : f32
      %39 = vector.broadcast %cst_29 : f32 to vector<2x32xf32>
      %cst_30 = arith.constant 0.000000e+00 : f32
      %40 = vector.broadcast %cst_30 : f32 to vector<2x32xf32>
      %cst_31 = arith.constant 0.000000e+00 : f32
      %41 = vector.broadcast %cst_31 : f32 to vector<2x32xf32>
      %42 = vector.extract_strided_slice %37 {offsets = [0, 0], sizes = [2, 128], strides = [1, 1]} : vector<8x128xf32> to vector<2x128xf32>
      %cst_32 = arith.constant dense<0.000000e+00> : vector<2x128xf32>
      %43 = tpu.matmul %38, %27, %cst_32 {dimension_numbers = #tpu.dot_dimension_numbers<[1], [0], [0], [1], [0, 0, 1, 1], [], []>} : vector<2x32xf32>, vector<32x128xf32>, vector<2x128xf32> -> vector<2x128xf32>
      %44 = arith.addf %42, %43 : vector<2x128xf32>
      %45 = arith.negf %44 : vector<2x128xf32>
      %46 = math.exp %45 : vector<2x128xf32>
      %cst_33 = arith.constant 1.000000e+00 : f32
      %47 = vector.broadcast %cst_33 : f32 to vector<2x128xf32>
      %48 = arith.addf %47, %46 : vector<2x128xf32>
      %49 = arith.divf %47, %48 : vector<2x128xf32>
      %50 = vector.extract_strided_slice %49 {offsets = [0, 0], sizes = [2, 32], strides = [1, 1]} : vector<2x128xf32> to vector<2x32xf32>
      %51 = vector.extract_strided_slice %49 {offsets = [0, 32], sizes = [2, 32], strides = [1, 1]} : vector<2x128xf32> to vector<2x32xf32>
      %52 = vector.extract_strided_slice %49 {offsets = [0, 96], sizes = [2, 32], strides = [1, 1]} : vector<2x128xf32> to vector<2x32xf32>
      %53 = vector.extract_strided_slice %44 {offsets = [0, 64], sizes = [2, 32], strides = [1, 1]} : vector<2x128xf32> to vector<2x32xf32>
      %54 = math.tanh %53 : vector<2x32xf32>
      %55 = arith.mulf %51, %39 : vector<2x32xf32>
      %56 = arith.mulf %50, %54 : vector<2x32xf32>
      %57 = arith.addf %55, %56 : vector<2x32xf32>
      %58 = math.tanh %57 : vector<2x32xf32>
      %59 = arith.mulf %52, %58 : vector<2x32xf32>
      %cst_34 = arith.constant dense<0.000000e+00> : vector<2x128xf32>
      %60 = tpu.matmul %59, %28, %cst_34 {dimension_numbers = #tpu.dot_dimension_numbers<[1], [0], [0], [1], [0, 0, 1, 1], [], []>} : vector<2x32xf32>, vector<32x128xf32>, vector<2x128xf32> -> vector<2x128xf32>
      %61 = vector.broadcast %30 : vector<1x128xf32> to vector<2x128xf32>
      %62 = arith.addf %60, %61 : vector<2x128xf32>
      %cst_35 = arith.constant dense<0.000000e+00> : vector<2x128xf32>
      %63 = tpu.matmul %40, %29, %cst_35 {dimension_numbers = #tpu.dot_dimension_numbers<[1], [0], [0], [1], [0, 0, 1, 1], [], []>} : vector<2x32xf32>, vector<32x128xf32>, vector<2x128xf32> -> vector<2x128xf32>
      %64 = arith.addf %62, %63 : vector<2x128xf32>
      %65 = arith.negf %64 : vector<2x128xf32>
      %66 = math.exp %65 : vector<2x128xf32>
      %cst_36 = arith.constant 1.000000e+00 : f32
      %67 = vector.broadcast %cst_36 : f32 to vector<2x128xf32>
      %68 = arith.addf %67, %66 : vector<2x128xf32>
      %69 = arith.divf %67, %68 : vector<2x128xf32>
      %70 = vector.extract_strided_slice %69 {offsets = [0, 0], sizes = [2, 32], strides = [1, 1]} : vector<2x128xf32> to vector<2x32xf32>
      %71 = vector.extract_strided_slice %69 {offsets = [0, 32], sizes = [2, 32], strides = [1, 1]} : vector<2x128xf32> to vector<2x32xf32>
      %72 = vector.extract_strided_slice %69 {offsets = [0, 96], sizes = [2, 32], strides = [1, 1]} : vector<2x128xf32> to vector<2x32xf32>
      %73 = vector.extract_strided_slice %64 {offsets = [0, 64], sizes = [2, 32], strides = [1, 1]} : vector<2x128xf32> to vector<2x32xf32>
      %74 = math.tanh %73 : vector<2x32xf32>
      %75 = arith.mulf %71, %41 : vector<2x32xf32>
      %76 = arith.mulf %70, %74 : vector<2x32xf32>
      %77 = arith.addf %75, %76 : vector<2x32xf32>
      %78 = math.tanh %77 : vector<2x32xf32>
      %79 = arith.mulf %72, %78 : vector<2x32xf32>
      %80 = vector.extract_strided_slice %37 {offsets = [2, 0], sizes = [2, 128], strides = [1, 1]} : vector<8x128xf32> to vector<2x128xf32>
      %cst_37 = arith.constant dense<0.000000e+00> : vector<2x128xf32>
      %81 = tpu.matmul %59, %27, %cst_37 {dimension_numbers = #tpu.dot_dimension_numbers<[1], [0], [0], [1], [0, 0, 1, 1], [], []>} : vector<2x32xf32>, vector<32x128xf32>, vector<2x128xf32> -> vector<2x128xf32>
      %82 = arith.addf %80, %81 : vector<2x128xf32>
      %83 = arith.negf %82 : vector<2x128xf32>
      %84 = math.exp %83 : vector<2x128xf32>
      %cst_38 = arith.constant 1.000000e+00 : f32
      %85 = vector.broadcast %cst_38 : f32 to vector<2x128xf32>
      %86 = arith.addf %85, %84 : vector<2x128xf32>
      %87 = arith.divf %85, %86 : vector<2x128xf32>
      %88 = vector.extract_strided_slice %87 {offsets = [0, 0], sizes = [2, 32], strides = [1, 1]} : vector<2x128xf32> to vector<2x32xf32>
      %89 = vector.extract_strided_slice %87 {offsets = [0, 32], sizes = [2, 32], strides = [1, 1]} : vector<2x128xf32> to vector<2x32xf32>
      %90 = vector.extract_strided_slice %87 {offsets = [0, 96], sizes = [2, 32], strides = [1, 1]} : vector<2x128xf32> to vector<2x32xf32>
      %91 = vector.extract_strided_slice %82 {offsets = [0, 64], sizes = [2, 32], strides = [1, 1]} : vector<2x128xf32> to vector<2x32xf32>
      %92 = math.tanh %91 : vector<2x32xf32>
      %93 = arith.mulf %89, %57 : vector<2x32xf32>
      %94 = arith.mulf %88, %92 : vector<2x32xf32>
      %95 = arith.addf %93, %94 : vector<2x32xf32>
      %96 = math.tanh %95 : vector<2x32xf32>
      %97 = arith.mulf %90, %96 : vector<2x32xf32>
      %cst_39 = arith.constant dense<0.000000e+00> : vector<2x128xf32>
      %98 = tpu.matmul %97, %28, %cst_39 {dimension_numbers = #tpu.dot_dimension_numbers<[1], [0], [0], [1], [0, 0, 1, 1], [], []>} : vector<2x32xf32>, vector<32x128xf32>, vector<2x128xf32> -> vector<2x128xf32>
      %99 = vector.broadcast %30 : vector<1x128xf32> to vector<2x128xf32>
      %100 = arith.addf %98, %99 : vector<2x128xf32>
      %cst_40 = arith.constant dense<0.000000e+00> : vector<2x128xf32>
      %101 = tpu.matmul %79, %29, %cst_40 {dimension_numbers = #tpu.dot_dimension_numbers<[1], [0], [0], [1], [0, 0, 1, 1], [], []>} : vector<2x32xf32>, vector<32x128xf32>, vector<2x128xf32> -> vector<2x128xf32>
      %102 = arith.addf %100, %101 : vector<2x128xf32>
      %103 = arith.negf %102 : vector<2x128xf32>
      %104 = math.exp %103 : vector<2x128xf32>
      %cst_41 = arith.constant 1.000000e+00 : f32
      %105 = vector.broadcast %cst_41 : f32 to vector<2x128xf32>
      %106 = arith.addf %105, %104 : vector<2x128xf32>
      %107 = arith.divf %105, %106 : vector<2x128xf32>
      %108 = vector.extract_strided_slice %107 {offsets = [0, 0], sizes = [2, 32], strides = [1, 1]} : vector<2x128xf32> to vector<2x32xf32>
      %109 = vector.extract_strided_slice %107 {offsets = [0, 32], sizes = [2, 32], strides = [1, 1]} : vector<2x128xf32> to vector<2x32xf32>
      %110 = vector.extract_strided_slice %107 {offsets = [0, 96], sizes = [2, 32], strides = [1, 1]} : vector<2x128xf32> to vector<2x32xf32>
      %111 = vector.extract_strided_slice %102 {offsets = [0, 64], sizes = [2, 32], strides = [1, 1]} : vector<2x128xf32> to vector<2x32xf32>
      %112 = math.tanh %111 : vector<2x32xf32>
      %113 = arith.mulf %109, %77 : vector<2x32xf32>
      %114 = arith.mulf %108, %112 : vector<2x32xf32>
      %115 = arith.addf %113, %114 : vector<2x32xf32>
      %116 = math.tanh %115 : vector<2x32xf32>
      %117 = arith.mulf %110, %116 : vector<2x32xf32>
      %118 = vector.extract_strided_slice %37 {offsets = [4, 0], sizes = [2, 128], strides = [1, 1]} : vector<8x128xf32> to vector<2x128xf32>
      %cst_42 = arith.constant dense<0.000000e+00> : vector<2x128xf32>
      %119 = tpu.matmul %97, %27, %cst_42 {dimension_numbers = #tpu.dot_dimension_numbers<[1], [0], [0], [1], [0, 0, 1, 1], [], []>} : vector<2x32xf32>, vector<32x128xf32>, vector<2x128xf32> -> vector<2x128xf32>
      %120 = arith.addf %118, %119 : vector<2x128xf32>
      %121 = arith.negf %120 : vector<2x128xf32>
      %122 = math.exp %121 : vector<2x128xf32>
      %cst_43 = arith.constant 1.000000e+00 : f32
      %123 = vector.broadcast %cst_43 : f32 to vector<2x128xf32>
      %124 = arith.addf %123, %122 : vector<2x128xf32>
      %125 = arith.divf %123, %124 : vector<2x128xf32>
      %126 = vector.extract_strided_slice %125 {offsets = [0, 0], sizes = [2, 32], strides = [1, 1]} : vector<2x128xf32> to vector<2x32xf32>
      %127 = vector.extract_strided_slice %125 {offsets = [0, 32], sizes = [2, 32], strides = [1, 1]} : vector<2x128xf32> to vector<2x32xf32>
      %128 = vector.extract_strided_slice %125 {offsets = [0, 96], sizes = [2, 32], strides = [1, 1]} : vector<2x128xf32> to vector<2x32xf32>
      %129 = vector.extract_strided_slice %120 {offsets = [0, 64], sizes = [2, 32], strides = [1, 1]} : vector<2x128xf32> to vector<2x32xf32>
      %130 = math.tanh %129 : vector<2x32xf32>
      %131 = arith.mulf %127, %95 : vector<2x32xf32>
      %132 = arith.mulf %126, %130 : vector<2x32xf32>
      %133 = arith.addf %131, %132 : vector<2x32xf32>
      %134 = math.tanh %133 : vector<2x32xf32>
      %135 = arith.mulf %128, %134 : vector<2x32xf32>
      %cst_44 = arith.constant dense<0.000000e+00> : vector<2x128xf32>
      %136 = tpu.matmul %135, %28, %cst_44 {dimension_numbers = #tpu.dot_dimension_numbers<[1], [0], [0], [1], [0, 0, 1, 1], [], []>} : vector<2x32xf32>, vector<32x128xf32>, vector<2x128xf32> -> vector<2x128xf32>
      %137 = vector.broadcast %30 : vector<1x128xf32> to vector<2x128xf32>
      %138 = arith.addf %136, %137 : vector<2x128xf32>
      %cst_45 = arith.constant dense<0.000000e+00> : vector<2x128xf32>
      %139 = tpu.matmul %117, %29, %cst_45 {dimension_numbers = #tpu.dot_dimension_numbers<[1], [0], [0], [1], [0, 0, 1, 1], [], []>} : vector<2x32xf32>, vector<32x128xf32>, vector<2x128xf32> -> vector<2x128xf32>
      %140 = arith.addf %138, %139 : vector<2x128xf32>
      %141 = arith.negf %140 : vector<2x128xf32>
      %142 = math.exp %141 : vector<2x128xf32>
      %cst_46 = arith.constant 1.000000e+00 : f32
      %143 = vector.broadcast %cst_46 : f32 to vector<2x128xf32>
      %144 = arith.addf %143, %142 : vector<2x128xf32>
      %145 = arith.divf %143, %144 : vector<2x128xf32>
      %146 = vector.extract_strided_slice %145 {offsets = [0, 0], sizes = [2, 32], strides = [1, 1]} : vector<2x128xf32> to vector<2x32xf32>
      %147 = vector.extract_strided_slice %145 {offsets = [0, 32], sizes = [2, 32], strides = [1, 1]} : vector<2x128xf32> to vector<2x32xf32>
      %148 = vector.extract_strided_slice %145 {offsets = [0, 96], sizes = [2, 32], strides = [1, 1]} : vector<2x128xf32> to vector<2x32xf32>
      %149 = vector.extract_strided_slice %140 {offsets = [0, 64], sizes = [2, 32], strides = [1, 1]} : vector<2x128xf32> to vector<2x32xf32>
      %150 = math.tanh %149 : vector<2x32xf32>
      %151 = arith.mulf %147, %115 : vector<2x32xf32>
      %152 = arith.mulf %146, %150 : vector<2x32xf32>
      %153 = arith.addf %151, %152 : vector<2x32xf32>
      %154 = math.tanh %153 : vector<2x32xf32>
      %155 = arith.mulf %148, %154 : vector<2x32xf32>
      %156 = vector.extract_strided_slice %37 {offsets = [6, 0], sizes = [2, 128], strides = [1, 1]} : vector<8x128xf32> to vector<2x128xf32>
      %cst_47 = arith.constant dense<0.000000e+00> : vector<2x128xf32>
      %157 = tpu.matmul %135, %27, %cst_47 {dimension_numbers = #tpu.dot_dimension_numbers<[1], [0], [0], [1], [0, 0, 1, 1], [], []>} : vector<2x32xf32>, vector<32x128xf32>, vector<2x128xf32> -> vector<2x128xf32>
      %158 = arith.addf %156, %157 : vector<2x128xf32>
      %159 = arith.negf %158 : vector<2x128xf32>
      %160 = math.exp %159 : vector<2x128xf32>
      %cst_48 = arith.constant 1.000000e+00 : f32
      %161 = vector.broadcast %cst_48 : f32 to vector<2x128xf32>
      %162 = arith.addf %161, %160 : vector<2x128xf32>
      %163 = arith.divf %161, %162 : vector<2x128xf32>
      %164 = vector.extract_strided_slice %163 {offsets = [0, 0], sizes = [2, 32], strides = [1, 1]} : vector<2x128xf32> to vector<2x32xf32>
      %165 = vector.extract_strided_slice %163 {offsets = [0, 32], sizes = [2, 32], strides = [1, 1]} : vector<2x128xf32> to vector<2x32xf32>
      %166 = vector.extract_strided_slice %163 {offsets = [0, 96], sizes = [2, 32], strides = [1, 1]} : vector<2x128xf32> to vector<2x32xf32>
      %167 = vector.extract_strided_slice %158 {offsets = [0, 64], sizes = [2, 32], strides = [1, 1]} : vector<2x128xf32> to vector<2x32xf32>
      %168 = math.tanh %167 : vector<2x32xf32>
      %169 = arith.mulf %165, %133 : vector<2x32xf32>
      %170 = arith.mulf %164, %168 : vector<2x32xf32>
      %171 = arith.addf %169, %170 : vector<2x32xf32>
      %172 = math.tanh %171 : vector<2x32xf32>
      %173 = arith.mulf %166, %172 : vector<2x32xf32>
      %cst_49 = arith.constant dense<0.000000e+00> : vector<2x128xf32>
      %174 = tpu.matmul %173, %28, %cst_49 {dimension_numbers = #tpu.dot_dimension_numbers<[1], [0], [0], [1], [0, 0, 1, 1], [], []>} : vector<2x32xf32>, vector<32x128xf32>, vector<2x128xf32> -> vector<2x128xf32>
      %175 = vector.broadcast %30 : vector<1x128xf32> to vector<2x128xf32>
      %176 = arith.addf %174, %175 : vector<2x128xf32>
      %cst_50 = arith.constant dense<0.000000e+00> : vector<2x128xf32>
      %177 = tpu.matmul %155, %29, %cst_50 {dimension_numbers = #tpu.dot_dimension_numbers<[1], [0], [0], [1], [0, 0, 1, 1], [], []>} : vector<2x32xf32>, vector<32x128xf32>, vector<2x128xf32> -> vector<2x128xf32>
      %178 = arith.addf %176, %177 : vector<2x128xf32>
      %179 = arith.negf %178 : vector<2x128xf32>
      %180 = math.exp %179 : vector<2x128xf32>
      %cst_51 = arith.constant 1.000000e+00 : f32
      %181 = vector.broadcast %cst_51 : f32 to vector<2x128xf32>
      %182 = arith.addf %181, %180 : vector<2x128xf32>
      %183 = arith.divf %181, %182 : vector<2x128xf32>
      %184 = vector.extract_strided_slice %183 {offsets = [0, 0], sizes = [2, 32], strides = [1, 1]} : vector<2x128xf32> to vector<2x32xf32>
      %185 = vector.extract_strided_slice %183 {offsets = [0, 32], sizes = [2, 32], strides = [1, 1]} : vector<2x128xf32> to vector<2x32xf32>
      %186 = vector.extract_strided_slice %183 {offsets = [0, 96], sizes = [2, 32], strides = [1, 1]} : vector<2x128xf32> to vector<2x32xf32>
      %187 = vector.extract_strided_slice %178 {offsets = [0, 64], sizes = [2, 32], strides = [1, 1]} : vector<2x128xf32> to vector<2x32xf32>
      %188 = math.tanh %187 : vector<2x32xf32>
      %189 = arith.mulf %185, %153 : vector<2x32xf32>
      %190 = arith.mulf %184, %188 : vector<2x32xf32>
      %191 = arith.addf %189, %190 : vector<2x32xf32>
      %192 = math.tanh %191 : vector<2x32xf32>
      %193 = arith.mulf %186, %192 : vector<2x32xf32>
      %194 = vector.broadcast %31 : vector<1x32xf32> to vector<2x32xf32>
      %195 = arith.mulf %79, %194 : vector<2x32xf32>
      %cst_52 = arith.constant dense<0.000000e+00> : vector<2xf32>
      %196 = vector.multi_reduction <add>, %195, %cst_52 [1] : vector<2x32xf32> to vector<2xf32>
      %197 = vector.shape_cast %196 : vector<2xf32> to vector<2x1xf32>
      %198 = vector.broadcast %31 : vector<1x32xf32> to vector<2x32xf32>
      %199 = arith.mulf %117, %198 : vector<2x32xf32>
      %cst_53 = arith.constant dense<0.000000e+00> : vector<2xf32>
      %200 = vector.multi_reduction <add>, %199, %cst_53 [1] : vector<2x32xf32> to vector<2xf32>
      %201 = vector.shape_cast %200 : vector<2xf32> to vector<2x1xf32>
      %202 = vector.broadcast %31 : vector<1x32xf32> to vector<2x32xf32>
      %203 = arith.mulf %155, %202 : vector<2x32xf32>
      %cst_54 = arith.constant dense<0.000000e+00> : vector<2xf32>
      %204 = vector.multi_reduction <add>, %203, %cst_54 [1] : vector<2x32xf32> to vector<2xf32>
      %205 = vector.shape_cast %204 : vector<2xf32> to vector<2x1xf32>
      %206 = vector.broadcast %31 : vector<1x32xf32> to vector<2x32xf32>
      %207 = arith.mulf %193, %206 : vector<2x32xf32>
      %cst_55 = arith.constant dense<0.000000e+00> : vector<2xf32>
      %208 = vector.multi_reduction <add>, %207, %cst_55 [1] : vector<2x32xf32> to vector<2xf32>
      %209 = vector.shape_cast %208 : vector<2xf32> to vector<2x1xf32>
      %210 = arith.maximumf %197, %201 : vector<2x1xf32>
      %211 = arith.maximumf %210, %205 : vector<2x1xf32>
      %212 = arith.maximumf %211, %209 : vector<2x1xf32>
      %213 = arith.subf %197, %212 : vector<2x1xf32>
      %214 = math.exp %213 : vector<2x1xf32>
      %215 = arith.subf %201, %212 : vector<2x1xf32>
      %216 = math.exp %215 : vector<2x1xf32>
      %217 = arith.subf %205, %212 : vector<2x1xf32>
      %218 = math.exp %217 : vector<2x1xf32>
      %219 = arith.subf %209, %212 : vector<2x1xf32>
      %220 = math.exp %219 : vector<2x1xf32>
      %221 = arith.addf %214, %216 : vector<2x1xf32>
      %222 = arith.addf %221, %218 : vector<2x1xf32>
      %223 = arith.addf %222, %220 : vector<2x1xf32>
      %cst_56 = arith.constant 1.000000e+00 : f32
      %224 = vector.broadcast %cst_56 : f32 to vector<2x1xf32>
      %225 = arith.divf %224, %223 : vector<2x1xf32>
      %cst_57 = arith.constant 0.000000e+00 : f32
      %226 = vector.broadcast %cst_57 : f32 to vector<2x32xf32>
      %227 = arith.mulf %214, %225 : vector<2x1xf32>
      %228 = vector.broadcast %227 : vector<2x1xf32> to vector<2x32xf32>
      %229 = arith.mulf %228, %79 : vector<2x32xf32>
      %230 = arith.addf %226, %229 : vector<2x32xf32>
      %231 = arith.mulf %216, %225 : vector<2x1xf32>
      %232 = vector.broadcast %231 : vector<2x1xf32> to vector<2x32xf32>
      %233 = arith.mulf %232, %117 : vector<2x32xf32>
      %234 = arith.addf %230, %233 : vector<2x32xf32>
      %235 = arith.mulf %218, %225 : vector<2x1xf32>
      %236 = vector.broadcast %235 : vector<2x1xf32> to vector<2x32xf32>
      %237 = arith.mulf %236, %155 : vector<2x32xf32>
      %238 = arith.addf %234, %237 : vector<2x32xf32>
      %239 = arith.mulf %220, %225 : vector<2x1xf32>
      %240 = vector.broadcast %239 : vector<2x1xf32> to vector<2x32xf32>
      %241 = arith.mulf %240, %193 : vector<2x32xf32>
      %242 = arith.addf %238, %241 : vector<2x32xf32>
      %cst_58 = arith.constant 0.000000e+00 : f32
      %243 = vector.broadcast %cst_58 : f32 to vector<6x32xf32>
      %244 = tpu.concatenate %242, %243 in 0 : vector<2x32xf32>, vector<6x32xf32> -> vector<8x32xf32>
      %cst_59 = arith.constant dense<0.000000e+00> : vector<8x128xf32>
      %245 = tpu.matmul %244, %32, %cst_59 {dimension_numbers = #tpu.dot_dimension_numbers<[1], [0], [0], [1], [0, 0, 1, 1], [], []>} : vector<8x32xf32>, vector<32x128xf32>, vector<8x128xf32> -> vector<8x128xf32>
      %246 = vector.broadcast %33 : vector<1x128xf32> to vector<8x128xf32>
      %247 = arith.addf %245, %246 : vector<8x128xf32>
      %c0_60 = arith.constant 0 : index
      %c0_61 = arith.constant 0 : index
      %248 = vector.load %arg4[%c0_60, %c0_61] : memref<8x128xf32, #tpu.memory_space<vmem>>, vector<8x128xf32>
      tpu.vector_store %arg4[%c0_60, %c0_61], %247 {strides = array<i32>} : memref<8x128xf32, #tpu.memory_space<vmem>>, vector<8x128xf32>,
    } else {
    }
    return
  }
  func.func @transform_0(%arg0: i32) -> (i32, i32) {
    %c0_i32 = arith.constant 0 : i32
    %c0_i32_0 = arith.constant 0 : i32
    return %c0_i32, %arg0 : i32, i32
  }
  func.func @transform_1(%arg0: i32) -> (i32, i32) {
    %c0_i32 = arith.constant 0 : i32
    %c0_i32_0 = arith.constant 0 : i32
    return %arg0, %c0_i32 : i32, i32
  }
  func.func @transform_2(%arg0: i32) -> (i32, i32) {
    %c0_i32 = arith.constant 0 : i32
    %c0_i32_0 = arith.constant 0 : i32
    %c0_i32_1 = arith.constant 0 : i32
    return %c0_i32, %c0_i32_0 : i32, i32
  }
  func.func @transform_3(%arg0: i32) -> (i32, i32) {
    %c0_i32 = arith.constant 0 : i32
    %c0_i32_0 = arith.constant 0 : i32
    %c0_i32_1 = arith.constant 0 : i32
    return %c0_i32, %c0_i32_0 : i32, i32
  }
}

</mosaic_0001>

<bundles_post_ra>
// kernel: tpu_custom_call.1
= control target key start
LH: loop header
LB: loop body
LE: loop exit
PB: predicated region body
PF: predicated region fallthrough
CT: control target
= control target key end

     0   :  { %8 = vsyncpa [#allocation5], 0  ;;  %s3837_s0 = inlined_call_operand.hbm [shape: bf16[8,1024], index: 0, kind: input, shape index: {}]   ;;  %s3838_s1 = inlined_call_operand.hbm [shape: bf16[1024,1024], index: 1, kind: input, shape index: {}]   ;;  %s3839_s2 = inlined_call_operand.hbm [shape: f32[672,128], index: 2, kind: input, shape index: {}]   ;;  %s3840_s3 = inlined_call_operand.hbm [shape: f32[8,128], index: 3, kind: output, shape index: {}]  }
   0x1   :  { %10 = vsyncpa [#allocation5 + $0x1], 0 }
   0x2   :  { %11 = vsyncpa [#allocation8], 0 }
   0x3   :  { %13 = vsyncpa [#allocation8 + $0x1], 0 }
   0x4   :  { %14 = vsyncpa [#allocation6], 0  ;;  %s3292_s12 = smov 0   ;;  %s3294_s13 = smov 0  }
   0x5   :  { %s3296_s14 = smov 0   ;;  %s3298_s15 = smov 0  }
   0x6 LB: > { %s130_s18 = sshll.u32 %s3839_s2, 4  ;;  %s3314_s19 = sadd.s32 4294967295, %s3258_s15   ;;  %s3258_s15 = sphi %s3298_s15, %s3847_s15   ;;  %s3254_s14 = sphi %s3296_s14, %s3846_s14   ;;  %s3250_s13 = sphi %s3294_s13, %s3845_s13   ;;  %s3246_s12 = sphi %s3292_s12, %s3844_s12   ;;  %s131_s18 = int_to_ptr.hbm [resolvable:$true] %s130_s18 }
   0x7   : > { %p2262_p0 = scmp.ge.s32.totalorder %s3258_s15, 1  ;;  %p41_p1 = scmp.eq.s32.totalorder %s3314_s19, 0 }
   0x8   : > { %p119_p2 = scmp.lt.s32.totalorder %s3258_s15, 5  ;;  %p2263_p3 = scmp.ne.s32.totalorder %s3314_s19, 0 }
   0x9   : > { %s3260_s21 = smov [#allocation9]   ;;  %s3261_s23 = smov 128  }
   0xa   : > { %p3320_p4 = pnand %p2262_p0, %p119_p2  ;;  %s132_s22 = sshll.u32 %s3260_s21, 4  ;;  %s133_s22 = int_to_ptr.vmem [resolvable:$true] %s132_s22 }
   0xb   : > { %s3262_s24 = smov 8   ;;  %s3329_s25 = sadd.s32 1, %s3258_s15  }
   0xc   : > { %p2956_p5 = pneg %p3320_p4  ;;  %s24_s26 = ssub.s32 %s3258_s15, %s3329_s25 }
   0xd   : > { %s27_s27 = sadd.s32 1, %s3254_s14  ;;  %p25_p7 = scmp.eq.s32.totalorder %s24_s26, 0 }
   0xe   : > { %p2957_p6 = pnand %p2956_p5, %p41_p1  ;;  %p34_p8 = scmp.ne.s32.totalorder %s3254_s14, %s3250_s13 }
   0xf   : > { %p35_p9 = scmp.eq.s32.totalorder %s3258_s15, 0  ;;  %p40_p10 = scmp.ne.s32.totalorder %s3250_s13, %s3246_s12 }
  0x10   : > { %2959 = dma.hbm_to_vmem [thread:$0]  (!%p2957_p6), %s131_s18, 10752, %s133_s22, [#allocation8], %s3261_s23, %s3261_s23, %s3262_s24  }
  0x11   : > { %s3339_s28 = scalar_select %p25_p7, %s3254_s14, %s27_s27  }
  0x12   : > { %p36_p11 = por %p35_p9, %p34_p8  ;;  %p3343_p12 = por %p41_p1, %p40_p10 }
  0x13   : > { %p2968_p13 = scmp.lt.s32.totalorder %s3258_s15, 4  ;;  %s146_s30 = sand.u32 1, %s3254_s14  }
  0x14   : > { %s2265_s4 = sshll.u32 %s146_s30, 3  ;;  %s2813_s5 = sshll.u32 %s3258_s15, 3 }
  0x15   : > { %s155_s8 = scalar_lea.hbm %s3837_s0, %s2813_s5  ;;  %s150_s9 = scalar_lea.vmem [#allocation4], %s2265_s4 }
  0x16   : > { %s159_s10 = sshll.u32 %s150_s9, 4  ;;  %s157_s11 = sshll.u32 %s155_s8, 4  ;;  %s160_s10 = int_to_ptr.vmem [resolvable:$true] %s159_s10  ;;  %s158_s11 = int_to_ptr.hbm [resolvable:$true] %s157_s11 }
  0x17   : > { %p3353_p0 = pnand %p2968_p13, %p36_p11  ;;  %s2268_s16 = sshll.u32 %s146_s30, 10 }
  0x18   : > { %s166_s17 = sand.u32 1, %s3258_s15   ;;  %s147_s18 = scalar_lea.sflag [#allocation5], %s146_s30 }
  0x19   : > { %s3124_s21 = sshra.s32 %s158_s11, 4  ;;  %p3128_p5 = pneg %p3353_p0  ;;  %s3125_s21 = int_to_ptr.hbm [resolvable:$true] %s3124_s21 }
  0x1a   : > { %s3126_s22 = scalar_lea.hbm %s3125_s21, 8  ;;  %s3131_s26 = scalar_lea.hbm %s3837_s0, 32 }
  0x1b   : > { %p3127_p2 = scmp.ne.s32.totalorder %s3125_s21, %s3126_s22  ;;  %p3132_p8 = scmp.lt.s32.totalorder %s3125_s21, %s3837_s0 }
  0x1c   : > { %p3133_p9 = scmp.lt.s32.totalorder %s3131_s26, %s3126_s22 }
  0x1d   : > { %p3129_p6 = pnand %p3128_p5, %p3127_p2 }
  0x1e   : > { %p3134_p10 = por %p3133_p9, %p3132_p8 }
  0x1f   : > { %p3130_p7 = pneg %p3129_p6 }
  0x21   : > { %p3135_p11 = pnand %p3134_p10, %p3130_p7 }
  0x23   : > { %3138 = shalt.err (!%p3135_p11)
}
  0x24   : > { %2963 = dma.hbm_to_vmem [thread:$0]  (!%p3353_p0), %s158_s11, 128, %s160_s10, %s147_s18  }
  0x25   : > { %s170_s30 = scalar_lea.vmem [#allocation7], %s2268_s16  ;;  %s2815_s6 = sshll.u32 %s3258_s15, 10 }
  0x26   : > { %s179_s5 = sshll.u32 %s170_s30, 4  ;;  %s176_s9 = scalar_lea.hbm %s3838_s1, %s2815_s6  ;;  %s180_s5 = int_to_ptr.vmem [resolvable:$true] %s179_s5 }
  0x27   : > { %s177_s23 = sshll.u32 %s176_s9, 4  ;;  %s167_s21 = scalar_lea.sflag [#allocation8], %s166_s17  ;;  %s178_s23 = int_to_ptr.hbm [resolvable:$true] %s177_s23 }
  0x28   : > { %s3154_s22 = sshra.s32 %s178_s23, 4  ;;  %s3161_s16 = scalar_lea.hbm %s3838_s1, 4096  ;;  %s3155_s22 = int_to_ptr.hbm [resolvable:$true] %s3154_s22 }
  0x29   : > { %s3156_s24 = scalar_lea.hbm %s3155_s22, 1024  ;;  %p3162_p7 = scmp.lt.s32.totalorder %s3155_s22, %s3838_s1 }
  0x2a   : > { %p3157_p13 = scmp.ne.s32.totalorder %s3155_s22, %s3156_s24  ;;  %p3163_p8 = scmp.lt.s32.totalorder %s3161_s16, %s3156_s24 }
  0x2c   : > { %p3159_p2 = pnand %p3157_p13, %p3128_p5  ;;  %p3164_p9 = por %p3163_p8, %p3162_p7 }
  0x2e   : > { %p3160_p6 = pneg %p3159_p2 }
  0x30   : > { %p3165_p10 = pnand %p3164_p9, %p3160_p6 }
  0x32   : > { %3168 = shalt.err (!%p3165_p10)
}
  0x33   : > { %s3263_s17 = smov 512   ;;  %s3264_s26 = smov 32  }
  0x34   : > { %2966 = dma.hbm_to_vmem [thread:$0]  (!%p3353_p0), %s178_s23, 16384, %s180_s5, %s167_s21, %s3263_s17, %s3263_s17, %s3264_s26  }
  0x35   : > { %191 = sbr.rel (%p3320_p4) target bundleno = 3750 (0xea6), region = 32  ;;  %s193_s27 = sand.u32 (!%p3320_p4), 1, %s3250_s13  }
  0x36   : > { %s2273_s4 = sshll.u32 (!%p3320_p4), %s193_s27, 3  ;;  %s194_s30 = scalar_lea.sflag (!%p3320_p4), [#allocation5], %s193_s27 }
  0x37   : > { %s3389_s6 = scalar_lea.vmem (!%p3320_p4), [#allocation4], %s2273_s4 }
  0x3a   : > { %3229 = dma.done.wait (%p3343_p12), %s194_s30, 128  }
  0x3b   : > { %3231 = vsyncadd (%p3343_p12), %s194_s30, 4294967168  ;;  %s203_s7 = sand.u32 1, %s3314_s19   ;;  %s2274_s12 = sshll.u32 %s193_s27, 10 }
  0x3c   : > { %s204_s5 = scalar_lea.sflag [#allocation8], %s203_s7  ;;  %s3396_s8 = scalar_lea.vmem [#allocation7], %s2274_s12 }
  0x3d   : > { %3233 = dma.done.wait (%p3343_p12), %s204_s5, 16384  }
  0x3e   : > { %3235 = vsyncadd (%p3343_p12), %s204_s5, 4294950912 }
  0x3f   : > { %3237 = dma.done.wait (%p41_p1), [#allocation8], 10752  }
  0x40   : > { %3239 = vsyncadd (%p41_p1), [#allocation8], 4294956544  ;;  %v2502_v0 = vld [vmem:[%s3396_s8 + $0x1c0] sm:$0xf]  ;;  %v2872_v5 = vld [vmem:[%s3396_s8 + $0x1c4] sm:$0xf] }
  0x41   : > { %v2876_v1 = vld [vmem:[%s3396_s8 + $0x1dc] sm:$0xf0]  ;;  %v2504_v6 = vld [vmem:[%s3396_s8 + $0x1e0] sm:$0xf0] }
  0x42   : > { %v2758_v2 = vld [vmem:[%s3396_s8 + $0x3c0] sm:$0xf]  ;;  %v2503_v3 = vor.u32 %v2876_v1, %v2502_v0  ;;  %v2507_v8 = vor.u32 %v2872_v5, %v2504_v6  ;;  %v2936_v9 = vld [vmem:[%s3396_s8 + $0x3c4] sm:$0xf] }
  0x43   : > { %v2940_v4 = vld [vmem:[%s3396_s8 + $0x3dc] sm:$0xf0]  ;;  %v2760_v10 = vld [vmem:[%s3396_s8 + $0x3e0] sm:$0xf0] }
  0x44   : > { %v2759_v7 = vor.u32 %v2940_v4, %v2758_v2  ;;  %v2470_v11 = vld [vmem:[%s3396_s8 + $0x180] sm:$0xf]  ;;  %1014 = vmatpush.bf16.msra.mxu0 %v2503_v3  ;;  %v2763_v12 = vor.u32 %v2936_v9, %v2760_v10  ;;  %1040 = vmatpush.bf16.msra.mxu2 %v2507_v8  ;;  %v2864_v18 = vld [vmem:[%s3396_s8 + $0x184] sm:$0xf] }
  0x45   : > { %v2868_v13 = vld [vmem:[%s3396_s8 + $0x19c] sm:$0xf0]  ;;  %v2472_v19 = vld [vmem:[%s3396_s8 + $0x1a0] sm:$0xf0] }
  0x46   : > { %v2726_v14 = vld [vmem:[%s3396_s8 + $0x380] sm:$0xf]  ;;  %1027 = vmatpush.bf16.msra.mxu1 %v2759_v7  ;;  %v2471_v16 = vor.u32 %v2868_v13, %v2470_v11  ;;  %v2928_v20 = vld [vmem:[%s3396_s8 + $0x384] sm:$0xf]  ;;  %1053 = vmatpush.bf16.msra.mxu3 %v2763_v12  ;;  %v2475_v21 = vor.u32 %v2864_v18, %v2472_v19 }
  0x47   : > { %v2932_v15 = vld [vmem:[%s3396_s8 + $0x39c] sm:$0xf0]  ;;  %v2728_v22 = vld [vmem:[%s3396_s8 + $0x3a0] sm:$0xf0] }
  0x48   : > { %v2727_v17 = vor.u32 %v2932_v15, %v2726_v14  ;;  %v2438_v23 = vld [vmem:[%s3396_s8 + $0x140] sm:$0xf]  ;;  %v2731_v25 = vor.u32 %v2928_v20, %v2728_v22  ;;  %v2856_v28 = vld [vmem:[%s3396_s8 + $0x144] sm:$0xf]  ;;  %1015 = vmatpush.bf16.msra.mxu0 %v2471_v16  ;;  %1041 = vmatpush.bf16.msra.mxu2 %v2475_v21 }
  0x49   : > { %v2860_v24 = vld [vmem:[%s3396_s8 + $0x15c] sm:$0xf0]  ;;  %v2440_v30 = vld [vmem:[%s3396_s8 + $0x160] sm:$0xf0] }
  0x4a   : > { %v2694_v26 = vld [vmem:[%s3396_s8 + $0x340] sm:$0xf]  ;;  %v2439_v29 = vor.u32 %v2860_v24, %v2438_v23  ;;  %v2920_v31 = vld [vmem:[%s3396_s8 + $0x344] sm:$0xf]  ;;  %1028 = vmatpush.bf16.msra.mxu1 %v2727_v17  ;;  %v2443_v34 = vor.u32 %v2856_v28, %v2440_v30  ;;  %1054 = vmatpush.bf16.msra.mxu3 %v2731_v25  ;;  %v2510_v28 = vld [vmem:[%s3396_s8 + $0x1c8] sm:$0xf] }
  0x4b   : > { %v2924_v27 = vld [vmem:[%s3396_s8 + $0x35c] sm:$0xf0]  ;;  %v2696_v32 = vld [vmem:[%s3396_s8 + $0x360] sm:$0xf0]  ;;  %v2766_v30 = vld [vmem:[%s3396_s8 + $0x3c8] sm:$0xf] }
  0x4c   : > { %v2695_v33 = vor.u32 %v2924_v27, %v2694_v26  ;;  %v2406_v35 = vld [vmem:[%s3396_s8 + $0x100] sm:$0xf]  ;;  %v2699_v38 = vor.u32 %v2920_v31, %v2696_v32  ;;  %v2848_v40 = vld [vmem:[%s3396_s8 + $0x104] sm:$0xf]  ;;  %1016 = vmatpush.bf16.msra.mxu0 %v2439_v29  ;;  %1042 = vmatpush.bf16.msra.mxu2 %v2443_v34  ;;  %v2877_v29 = vld [vmem:[%s3396_s8 + $0x1e4] sm:$0xf0] }
  0x4d   : > { %v2852_v36 = vld [vmem:[%s3396_s8 + $0x11c] sm:$0xf0]  ;;  %v2408_v41 = vld [vmem:[%s3396_s8 + $0x120] sm:$0xf0]  ;;  %v2941_v32 = vld [vmem:[%s3396_s8 + $0x3e4] sm:$0xf0] }
  0x4e   : > { %v2662_v37 = vld [vmem:[%s3396_s8 + $0x300] sm:$0xf]  ;;  %v2912_v42 = vld [vmem:[%s3396_s8 + $0x304] sm:$0xf]  ;;  %v2407_v44 = vor.u32 %v2852_v36, %v2406_v35  ;;  %1029 = vmatpush.bf16.msra.mxu1 %v2695_v33  ;;  %v2411_v46 = vor.u32 %v2848_v40, %v2408_v41  ;;  %1055 = vmatpush.bf16.msra.mxu3 %v2699_v38  ;;  %v2873_v33 = vld [vmem:[%s3396_s8 + $0x1cc] sm:$0xf]  ;;  %v2511_v40 = vor.u32 %v2877_v29, %v2510_v28 }
  0x4f   : > { %v2916_v39 = vld [vmem:[%s3396_s8 + $0x31c] sm:$0xf0]  ;;  %v2664_v43 = vld [vmem:[%s3396_s8 + $0x320] sm:$0xf0]  ;;  %v2512_v34 = vld [vmem:[%s3396_s8 + $0x1e8] sm:$0xf0]  ;;  %v2767_v41 = vor.u32 %v2941_v32, %v2766_v30 }
  0x50   : > { %v2663_v45 = vor.u32 %v2916_v39, %v2662_v37  ;;  %v2374_v47 = vld [vmem:[%s3396_s8 + $0xc0] sm:$0xf]  ;;  %v2667_v50 = vor.u32 %v2912_v42, %v2664_v43  ;;  %v2840_v52 = vld [vmem:[%s3396_s8 + $0xc4] sm:$0xf]  ;;  %1017 = vmatpush.bf16.msra.mxu0 %v2407_v44  ;;  %1043 = vmatpush.bf16.msra.mxu2 %v2411_v46  ;;  %v2937_v37 = vld [vmem:[%s3396_s8 + $0x3cc] sm:$0xf]  ;;  %v2515_v42 = vor.u32 %v2873_v33, %v2512_v34 }
  0x51   : > { %v2844_v48 = vld [vmem:[%s3396_s8 + $0xdc] sm:$0xf0]  ;;  %v2376_v53 = vld [vmem:[%s3396_s8 + $0xe0] sm:$0xf0]  ;;  %v2768_v38 = vld [vmem:[%s3396_s8 + $0x3e8] sm:$0xf0] }
  0x52   : > { %v2630_v49 = vld [vmem:[%s3396_s8 + $0x2c0] sm:$0xf]  ;;  %v2904_v54 = vld [vmem:[%s3396_s8 + $0x2c4] sm:$0xf]  ;;  %v2375_v56 = vor.u32 %v2844_v48, %v2374_v47  ;;  %1030 = vmatpush.bf16.msra.mxu1 %v2663_v45  ;;  %v2379_v58 = vor.u32 %v2840_v52, %v2376_v53  ;;  %1056 = vmatpush.bf16.msra.mxu3 %v2667_v50  ;;  %v2478_v43 = vld [vmem:[%s3396_s8 + $0x188] sm:$0xf]  ;;  %v2771_v46 = vor.u32 %v2937_v37, %v2768_v38 }
  0x53   : > { %v2908_v51 = vld [vmem:[%s3396_s8 + $0x2dc] sm:$0xf0]  ;;  %v2632_v55 = vld [vmem:[%s3396_s8 + $0x2e0] sm:$0xf0]  ;;  %v2869_v44 = vld [vmem:[%s3396_s8 + $0x1a4] sm:$0xf0] }
  0x54   : > { %v2631_v57 = vor.u32 %v2908_v51, %v2630_v49  ;;  %v2342_v59 = vld [vmem:[%s3396_s8 + $0x80] sm:$0xf]  ;;  %v2635_v62 = vor.u32 %v2904_v54, %v2632_v55  ;;  %v2832_v0 = vld [vmem:[%s3396_s8 + $0x84] sm:$0xf]  ;;  %1018 = vmatpush.bf16.msra.mxu0 %v2375_v56  ;;  %1044 = vmatpush.bf16.msra.mxu2 %v2379_v58  ;;  %v2734_v45 = vld [vmem:[%s3396_s8 + $0x388] sm:$0xf]  ;;  %v2479_v52 = vor.u32 %v2869_v44, %v2478_v43 }
  0x55   : > { %v2836_v60 = vld [vmem:[%s3396_s8 + $0x9c] sm:$0xf0]  ;;  %v2344_v1 = vld [vmem:[%s3396_s8 + $0xa0] sm:$0xf0]  ;;  %v2933_v47 = vld [vmem:[%s3396_s8 + $0x3a4] sm:$0xf0] }
  0x56   : > { %v2598_v61 = vld [vmem:[%s3396_s8 + $0x280] sm:$0xf]  ;;  %v2896_v2 = vld [vmem:[%s3396_s8 + $0x284] sm:$0xf]  ;;  %v2343_v4 = vor.u32 %v2836_v60, %v2342_v59  ;;  %1031 = vmatpush.bf16.msra.mxu1 %v2631_v57  ;;  %v2347_v6 = vor.u32 %v2832_v0, %v2344_v1  ;;  %1057 = vmatpush.bf16.msra.mxu3 %v2635_v62  ;;  %v2865_v48 = vld [vmem:[%s3396_s8 + $0x18c] sm:$0xf]  ;;  %v2735_v53 = vor.u32 %v2933_v47, %v2734_v45 }
  0x57   : > { %v2900_v63 = vld [vmem:[%s3396_s8 + $0x29c] sm:$0xf0]  ;;  %v2600_v3 = vld [vmem:[%s3396_s8 + $0x2a0] sm:$0xf0]  ;;  %v2480_v49 = vld [vmem:[%s3396_s8 + $0x1a8] sm:$0xf0] }
  0x58   : > { %v2599_v5 = vor.u32 %v2900_v63, %v2598_v61  ;;  %v2310_v7 = vld [vmem:[%s3396_s8 + $0x40] sm:$0xf]  ;;  %v2603_v10 = vor.u32 %v2896_v2, %v2600_v3  ;;  %v2824_v12 = vld [vmem:[%s3396_s8 + $0x44] sm:$0xf]  ;;  %1019 = vmatpush.bf16.msra.mxu0 %v2343_v4  ;;  %1045 = vmatpush.bf16.msra.mxu2 %v2347_v6  ;;  %v2929_v50 = vld [vmem:[%s3396_s8 + $0x38c] sm:$0xf]  ;;  %v2483_v54 = vor.u32 %v2865_v48, %v2480_v49 }
  0x59   : > { %v2828_v8 = vld [vmem:[%s3396_s8 + $0x5c] sm:$0xf0]  ;;  %v2312_v13 = vld [vmem:[%s3396_s8 + $0x60] sm:$0xf0]  ;;  %v2736_v51 = vld [vmem:[%s3396_s8 + $0x3a8] sm:$0xf0] }
  0x5a   : > { %v2566_v9 = vld [vmem:[%s3396_s8 + $0x240] sm:$0xf]  ;;  %v2888_v14 = vld [vmem:[%s3396_s8 + $0x244] sm:$0xf]  ;;  %v2311_v16 = vor.u32 %v2828_v8, %v2310_v7  ;;  %1032 = vmatpush.bf16.msra.mxu1 %v2599_v5  ;;  %v2315_v20 = vor.u32 %v2824_v12, %v2312_v13  ;;  %1058 = vmatpush.bf16.msra.mxu3 %v2603_v10  ;;  %v2446_v55 = vld [vmem:[%s3396_s8 + $0x148] sm:$0xf]  ;;  %v2739_v58 = vor.u32 %v2929_v50, %v2736_v51 }
  0x5b   : > { %v2892_v11 = vld [vmem:[%s3396_s8 + $0x25c] sm:$0xf0]  ;;  %v2568_v15 = vld [vmem:[%s3396_s8 + $0x260] sm:$0xf0]  ;;  %v2861_v56 = vld [vmem:[%s3396_s8 + $0x164] sm:$0xf0] }
  0x5c   : > { %v2278_v17 = vld [vmem:[%s3396_s8] sm:$0xf]  ;;  %v2567_v19 = vor.u32 %v2892_v11, %v2566_v9  ;;  %v2816_v23 = vld [vmem:[%s3396_s8 + $0x4] sm:$0xf]  ;;  %v2571_v24 = vor.u32 %v2888_v14, %v2568_v15  ;;  %1020 = vmatpush.bf16.msra.mxu0 %v2311_v16  ;;  %1046 = vmatpush.bf16.msra.mxu2 %v2315_v20  ;;  %v2702_v57 = vld [vmem:[%s3396_s8 + $0x348] sm:$0xf]  ;;  %v2447_v0 = vor.u32 %v2861_v56, %v2446_v55 }
  0x5d   : > { %v2820_v18 = vld [vmem:[%s3396_s8 + $0x1c] sm:$0xf0]  ;;  %v2280_v25 = vld [vmem:[%s3396_s8 + $0x20] sm:$0xf0]  ;;  %v2925_v59 = vld [vmem:[%s3396_s8 + $0x364] sm:$0xf0] }
  0x5e   : > { %v2534_v21 = vld [vmem:[%s3396_s8 + $0x200] sm:$0xf]  ;;  %v2880_v26 = vld [vmem:[%s3396_s8 + $0x204] sm:$0xf]  ;;  %v2279_v31 = vor.u32 %v2820_v18, %v2278_v17  ;;  %1033 = vmatpush.bf16.msra.mxu1 %v2567_v19  ;;  %v2283_v36 = vor.u32 %v2816_v23, %v2280_v25  ;;  %1059 = vmatpush.bf16.msra.mxu3 %v2571_v24  ;;  %v2857_v60 = vld [vmem:[%s3396_s8 + $0x14c] sm:$0xf]  ;;  %v2703_v2 = vor.u32 %v2925_v59, %v2702_v57 }
  0x5f   : > { %v2884_v22 = vld [vmem:[%s3396_s8 + $0x21c] sm:$0xf0]  ;;  %v2536_v27 = vld [vmem:[%s3396_s8 + $0x220] sm:$0xf0]  ;;  %v2448_v61 = vld [vmem:[%s3396_s8 + $0x168] sm:$0xf0] }
  0x60   : > { %v2535_v35 = vor.u32 %v2884_v22, %v2534_v21  ;;  %v2539_v39 = vor.u32 %v2880_v26, %v2536_v27  ;;  %1021 = vmatpush.bf16.msra.mxu0 %v2279_v31  ;;  %1047 = vmatpush.bf16.msra.mxu2 %v2283_v36  ;;  %v2921_v62 = vld [vmem:[%s3396_s8 + $0x34c] sm:$0xf]  ;;  %v3495_v1 = vld [vmem:[%s3389_s6] sm:$0xff]  ;;  %v2451_v3 = vor.u32 %v2857_v60, %v2448_v61  ;;  %v2414_v4 = vld [vmem:[%s3396_s8 + $0x108] sm:$0xf] }
  0x61   : > { %v2704_v63 = vld [vmem:[%s3396_s8 + $0x368] sm:$0xf0]  ;;  %v2853_v5 = vld [vmem:[%s3396_s8 + $0x124] sm:$0xf0]  ;;  %v368_v7 = vunpack.c.l.b16 %v3495_v1  ;;  %v369_v8 = vunpack.c.h.b16 %v3495_v1 }
  0x62   : > { %1034 = vmatpush.bf16.msra.mxu1 %v2535_v35  ;;  %1060 = vmatpush.bf16.msra.mxu3 %v2539_v39  ;;  %v2670_v6 = vld [vmem:[%s3396_s8 + $0x308] sm:$0xf]  ;;  %v2707_v9 = vor.u32 %v2921_v62, %v2704_v63  ;;  %v2849_v11 = vld [vmem:[%s3396_s8 + $0x10c] sm:$0xf]  ;;  %v2415_v17 = vor.u32 %v2853_v5, %v2414_v4  ;;  %v2774_v4 = vld [vmem:[%s3396_s8 + $0x3d0] sm:$0xf] }
  0x63   : > { %v2917_v10 = vld [vmem:[%s3396_s8 + $0x324] sm:$0xf0]  ;;  %v2416_v12 = vld [vmem:[%s3396_s8 + $0x128] sm:$0xf0]  ;;  %v3507_v15 = vpack.c.b16 %v368_v7, %v368_v7  ;;  %v3509_v16 = vpack.c.b16 %v369_v8, %v369_v8  ;;  %v2874_v7 = vld [vmem:[%s3396_s8 + $0x1d4] sm:$0xf] }
  0x64   : > { %1066 = vmatpush.bf16.msrb.mxu0 %v2511_v40  ;;  %1092 = vmatpush.bf16.msrb.mxu2 %v2515_v42  ;;  %v2913_v13 = vld [vmem:[%s3396_s8 + $0x30c] sm:$0xf]  ;;  %v2671_v18 = vor.u32 %v2917_v10, %v2670_v6  ;;  %v2419_v19 = vor.u32 %v2849_v11, %v2416_v12  ;;  %v2382_v20 = vld [vmem:[%s3396_s8 + $0xc8] sm:$0xf]  ;;  %v2942_v6 = vld [vmem:[%s3396_s8 + $0x3ec] sm:$0xf0] }
  0x65   : > { %v2672_v14 = vld [vmem:[%s3396_s8 + $0x328] sm:$0xf0]  ;;  %v2845_v21 = vld [vmem:[%s3396_s8 + $0xe4] sm:$0xf0]  ;;  %1048 = vmatmul.bf16.vlgmr.msra.gmra.mxu2 %v3507_v15  ;;  %1061 = vmatmul.bf16.vlgmr.msra.gmra.mxu3 %v3509_v16  ;;  %v2520_v8 = vld [vmem:[%s3396_s8 + $0x1f0] sm:$0xf0] }
  0x66   : > { %1079 = vmatpush.bf16.msrb.mxu1 %v2767_v41  ;;  %1105 = vmatpush.bf16.msrb.mxu3 %v2771_v46  ;;  %v2638_v22 = vld [vmem:[%s3396_s8 + $0x2c8] sm:$0xf]  ;;  %v2675_v23 = vor.u32 %v2913_v13, %v2672_v14  ;;  %v2841_v25 = vld [vmem:[%s3396_s8 + $0xcc] sm:$0xf]  ;;  %v2383_v29 = vor.u32 %v2845_v21, %v2382_v20  ;;  %v2938_v11 = vld [vmem:[%s3396_s8 + $0x3d4] sm:$0xf] }
  0x67   : > { %v2909_v24 = vld [vmem:[%s3396_s8 + $0x2e4] sm:$0xf0]  ;;  %v2384_v26 = vld [vmem:[%s3396_s8 + $0xe8] sm:$0xf0]  ;;  %1022 = vmatmul.bf16.vlgmr.msra.gmra.mxu0 %v3507_v15  ;;  %1035 = vmatmul.bf16.vlgmr.msra.gmra.mxu1 %v3509_v16  ;;  %v2776_v12 = vld [vmem:[%s3396_s8 + $0x3f0] sm:$0xf0] }
  0x68   : > { %1067 = vmatpush.bf16.msrb.mxu0 %v2479_v52  ;;  %1093 = vmatpush.bf16.msrb.mxu2 %v2483_v54  ;;  %v2905_v27 = vld [vmem:[%s3396_s8 + $0x2cc] sm:$0xf]  ;;  %v2639_v30 = vor.u32 %v2909_v24, %v2638_v22  ;;  %v2387_v31 = vor.u32 %v2841_v25, %v2384_v26  ;;  %v2350_v32 = vld [vmem:[%s3396_s8 + $0x88] sm:$0xf]  ;;  %v2870_v20 = vld [vmem:[%s3396_s8 + $0x1ac] sm:$0xf0]  ;;  %v2779_v22 = vor.u32 %v2938_v11, %v2776_v12 }
  0x69   : > { %v2640_v28 = vld [vmem:[%s3396_s8 + $0x2e8] sm:$0xf0]  ;;  %v2837_v33 = vld [vmem:[%s3396_s8 + $0xa4] sm:$0xf0]  ;;  %v2742_v21 = vld [vmem:[%s3396_s8 + $0x390] sm:$0xf] }
  0x6a   : > { %1080 = vmatpush.bf16.msrb.mxu1 %v2735_v53  ;;  %1106 = vmatpush.bf16.msrb.mxu3 %v2739_v58  ;;  %v2606_v34 = vld [vmem:[%s3396_s8 + $0x288] sm:$0xf]  ;;  %v2643_v35 = vor.u32 %v2905_v27, %v2640_v28  ;;  %v2833_v37 = vld [vmem:[%s3396_s8 + $0x8c] sm:$0xf]  ;;  %v2351_v41 = vor.u32 %v2837_v33, %v2350_v32  ;;  %v2866_v24 = vld [vmem:[%s3396_s8 + $0x194] sm:$0xf] }
  0x6b   : > { %v2901_v36 = vld [vmem:[%s3396_s8 + $0x2a4] sm:$0xf0]  ;;  %v2352_v38 = vld [vmem:[%s3396_s8 + $0xa8] sm:$0xf0]  ;;  %v2488_v25 = vld [vmem:[%s3396_s8 + $0x1b0] sm:$0xf0] }
  0x6c   : > { %1068 = vmatpush.bf16.msrb.mxu0 %v2447_v0  ;;  %1094 = vmatpush.bf16.msrb.mxu2 %v2451_v3  ;;  %v2897_v39 = vld [vmem:[%s3396_s8 + $0x28c] sm:$0xf]  ;;  %v2607_v42 = vor.u32 %v2901_v36, %v2606_v34  ;;  %v2355_v43 = vor.u32 %v2833_v37, %v2352_v38  ;;  %v2318_v44 = vld [vmem:[%s3396_s8 + $0x48] sm:$0xf]  ;;  %v2878_v3 = vld [vmem:[%s3396_s8 + $0x1ec] sm:$0xf0] }
  0x6d   : > { %v2608_v40 = vld [vmem:[%s3396_s8 + $0x2a8] sm:$0xf0]  ;;  %v2829_v45 = vld [vmem:[%s3396_s8 + $0x64] sm:$0xf0]  ;;  %v2930_v26 = vld [vmem:[%s3396_s8 + $0x394] sm:$0xf] }
  0x6e   : > { %1081 = vmatpush.bf16.msrb.mxu1 %v2703_v2  ;;  %1107 = vmatpush.bf16.msrb.mxu3 %v2707_v9  ;;  %v2574_v46 = vld [vmem:[%s3396_s8 + $0x248] sm:$0xf]  ;;  %v2611_v47 = vor.u32 %v2897_v39, %v2608_v40  ;;  %v2825_v49 = vld [vmem:[%s3396_s8 + $0x4c] sm:$0xf]  ;;  %v2319_v53 = vor.u32 %v2829_v45, %v2318_v44  ;;  %v2518_v2 = vld [vmem:[%s3396_s8 + $0x1d0] sm:$0xf] }
  0x6f   : > { %v2893_v48 = vld [vmem:[%s3396_s8 + $0x264] sm:$0xf0]  ;;  %v2320_v50 = vld [vmem:[%s3396_s8 + $0x68] sm:$0xf0]  ;;  %v2519_v14 = vor.u32 %v2878_v3, %v2518_v2  ;;  %v2744_v27 = vld [vmem:[%s3396_s8 + $0x3b0] sm:$0xf0] }
  0x70   : > { %1069 = vmatpush.bf16.msrb.mxu0 %v2415_v17  ;;  %1095 = vmatpush.bf16.msrb.mxu2 %v2419_v19  ;;  %v2889_v51 = vld [vmem:[%s3396_s8 + $0x24c] sm:$0xf]  ;;  %v2286_v54 = vld [vmem:[%s3396_s8 + $0x8] sm:$0xf]  ;;  %v2575_v56 = vor.u32 %v2893_v48, %v2574_v46  ;;  %v2323_v57 = vor.u32 %v2825_v49, %v2320_v50  ;;  %v2775_v17 = vor.u32 %v2942_v6, %v2774_v4  ;;  %v2486_v19 = vld [vmem:[%s3396_s8 + $0x190] sm:$0xf] }
  0x71   : > { %v2576_v52 = vld [vmem:[%s3396_s8 + $0x268] sm:$0xf0]  ;;  %v2821_v55 = vld [vmem:[%s3396_s8 + $0x24] sm:$0xf0]  ;;  %v2487_v28 = vor.u32 %v2870_v20, %v2486_v19  ;;  %v2862_v32 = vld [vmem:[%s3396_s8 + $0x16c] sm:$0xf0]  ;;  %v2747_v34 = vor.u32 %v2930_v26, %v2744_v27 }
  0x72   : > { %1082 = vmatpush.bf16.msrb.mxu1 %v2671_v18  ;;  %1108 = vmatpush.bf16.msrb.mxu3 %v2675_v23  ;;  %v2542_v58 = vld [vmem:[%s3396_s8 + $0x208] sm:$0xf]  ;;  %v2817_v60 = vld [vmem:[%s3396_s8 + $0xc] sm:$0xf]  ;;  %v2579_v61 = vor.u32 %v2889_v51, %v2576_v52  ;;  %v2287_v5 = vor.u32 %v2821_v55, %v2286_v54  ;;  %v2523_v18 = vor.u32 %v2874_v7, %v2520_v8  ;;  %v2934_v23 = vld [vmem:[%s3396_s8 + $0x3ac] sm:$0xf0] }
  0x73   : > { %v2885_v59 = vld [vmem:[%s3396_s8 + $0x224] sm:$0xf0]  ;;  %v2288_v62 = vld [vmem:[%s3396_s8 + $0x28] sm:$0xf0]  ;;  %v2710_v33 = vld [vmem:[%s3396_s8 + $0x350] sm:$0xf] }
  0x74   : > { %1070 = vmatpush.bf16.msrb.mxu0 %v2383_v29  ;;  %1096 = vmatpush.bf16.msrb.mxu2 %v2387_v31  ;;  %v2881_v63 = vld [vmem:[%s3396_s8 + $0x20c] sm:$0xf]  ;;  %v2543_v9 = vor.u32 %v2885_v59, %v2542_v58  ;;  %v2291_v10 = vor.u32 %v2817_v60, %v2288_v62  ;;  %v2743_v29 = vor.u32 %v2934_v23, %v2742_v21  ;;  %v2454_v31 = vld [vmem:[%s3396_s8 + $0x150] sm:$0xf]  ;;  %v2858_v36 = vld [vmem:[%s3396_s8 + $0x154] sm:$0xf] }
  0x75   : > { %v2544_v0 = vld [vmem:[%s3396_s8 + $0x228] sm:$0xf0]  ;;  %v2456_v37 = vld [vmem:[%s3396_s8 + $0x170] sm:$0xf0]  ;;  %v2455_v40 = vor.u32 %v2862_v32, %v2454_v31  ;;  %v2854_v44 = vld [vmem:[%s3396_s8 + $0x12c] sm:$0xf0] }
  0x76   : > { %1083 = vmatpush.bf16.msrb.mxu1 %v2639_v30  ;;  %1109 = vmatpush.bf16.msrb.mxu3 %v2643_v35  ;;  %v2547_v13 = vor.u32 %v2881_v63, %v2544_v0  ;;  %v2491_v30 = vor.u32 %v2866_v24, %v2488_v25  ;;  %v2926_v35 = vld [vmem:[%s3396_s8 + $0x36c] sm:$0xf0]  ;;  %v2922_v38 = vld [vmem:[%s3396_s8 + $0x354] sm:$0xf] }
  0x77   : > { %v2712_v39 = vld [vmem:[%s3396_s8 + $0x370] sm:$0xf0]  ;;  %v2678_v45 = vld [vmem:[%s3396_s8 + $0x310] sm:$0xf] }
  0x78   : > { %1071 = vmatpush.bf16.msrb.mxu0 %v2351_v41  ;;  %1097 = vmatpush.bf16.msrb.mxu2 %v2355_v43  ;;  %v2711_v41 = vor.u32 %v2926_v35, %v2710_v33  ;;  %v2422_v43 = vld [vmem:[%s3396_s8 + $0x110] sm:$0xf]  ;;  %v2715_v46 = vor.u32 %v2922_v38, %v2712_v39  ;;  %v2850_v48 = vld [vmem:[%s3396_s8 + $0x114] sm:$0xf]  ;;  %v2526_v39 = vld [vmem:[%s3396_s8 + $0x1d8] sm:$0xf] }
  0x79   : > { %v2424_v49 = vld [vmem:[%s3396_s8 + $0x130] sm:$0xf0]  ;;  %v2423_v52 = vor.u32 %v2854_v44, %v2422_v43  ;;  %v2390_v55 = vld [vmem:[%s3396_s8 + $0xd0] sm:$0xf]  ;;  %v2943_v43 = vld [vmem:[%s3396_s8 + $0x3f4] sm:$0xf0] }
  0x7a   : > { %1084 = vmatpush.bf16.msrb.mxu1 %v2607_v42  ;;  %1110 = vmatpush.bf16.msrb.mxu3 %v2611_v47  ;;  %v2459_v42 = vor.u32 %v2858_v36, %v2456_v37  ;;  %v2918_v47 = vld [vmem:[%s3396_s8 + $0x32c] sm:$0xf0]  ;;  %v2914_v50 = vld [vmem:[%s3396_s8 + $0x314] sm:$0xf]  ;;  %v2427_v54 = vor.u32 %v2850_v48, %v2424_v49  ;;  %v2875_v44 = vld [vmem:[%s3396_s8 + $0x1dc] sm:$0xf] }
  0x7b   : > { %v2680_v51 = vld [vmem:[%s3396_s8 + $0x330] sm:$0xf0]  ;;  %v2910_v59 = vld [vmem:[%s3396_s8 + $0x2ec] sm:$0xf0]  ;;  %v2939_v48 = vld [vmem:[%s3396_s8 + $0x3dc] sm:$0xf] }
  0x7c   : > { %1072 = vmatpush.bf16.msrb.mxu0 %v2319_v53  ;;  %1098 = vmatpush.bf16.msrb.mxu2 %v2323_v57  ;;  %v2679_v53 = vor.u32 %v2918_v47, %v2678_v45  ;;  %v2646_v57 = vld [vmem:[%s3396_s8 + $0x2d0] sm:$0xf]  ;;  %v2683_v58 = vor.u32 %v2914_v50, %v2680_v51  ;;  %v2842_v60 = vld [vmem:[%s3396_s8 + $0xd4] sm:$0xf]  ;;  %v2528_v45 = vld [vmem:[%s3396_s8 + $0x1f8] sm:$0xf0] }
  0x7d   : > { %v2906_v62 = vld [vmem:[%s3396_s8 + $0x2d4] sm:$0xf]  ;;  %v2647_v2 = vor.u32 %v2910_v59, %v2646_v57  ;;  %v2358_v4 = vld [vmem:[%s3396_s8 + $0x90] sm:$0xf]  ;;  %v2784_v49 = vld [vmem:[%s3396_s8 + $0x3f8] sm:$0xf0] }
  0x7e   : > { %1085 = vmatpush.bf16.msrb.mxu1 %v2575_v56  ;;  %1111 = vmatpush.bf16.msrb.mxu3 %v2579_v61  ;;  %v2846_v56 = vld [vmem:[%s3396_s8 + $0xec] sm:$0xf0]  ;;  %v2392_v61 = vld [vmem:[%s3396_s8 + $0xf0] sm:$0xf0]  ;;  %v2787_v57 = vor.u32 %v2939_v48, %v2784_v49  ;;  %v2867_v59 = vld [vmem:[%s3396_s8 + $0x19c] sm:$0xf] }
  0x7f   : > { %v2648_v63 = vld [vmem:[%s3396_s8 + $0x2f0] sm:$0xf0]  ;;  %v2391_v0 = vor.u32 %v2846_v56, %v2390_v55  ;;  %v2395_v3 = vor.u32 %v2842_v60, %v2392_v61  ;;  %v2614_v6 = vld [vmem:[%s3396_s8 + $0x290] sm:$0xf]  ;;  %v2871_v55 = vld [vmem:[%s3396_s8 + $0x1b4] sm:$0xf0] }
  0x80   : > { %1073 = vmatpush.bf16.msrb.mxu0 %v2287_v5  ;;  %1099 = vmatpush.bf16.msrb.mxu2 %v2291_v10  ;;  %v2838_v5 = vld [vmem:[%s3396_s8 + $0xac] sm:$0xf0]  ;;  %v2651_v7 = vor.u32 %v2906_v62, %v2648_v63  ;;  %v2360_v10 = vld [vmem:[%s3396_s8 + $0xb0] sm:$0xf0]  ;;  %v2750_v56 = vld [vmem:[%s3396_s8 + $0x398] sm:$0xf] }
  0x81   : > { %v2902_v8 = vld [vmem:[%s3396_s8 + $0x2ac] sm:$0xf0]  ;;  %v2898_v11 = vld [vmem:[%s3396_s8 + $0x294] sm:$0xf]  ;;  %v2496_v60 = vld [vmem:[%s3396_s8 + $0x1b8] sm:$0xf0] }
  0x82   : > { %1086 = vmatpush.bf16.msrb.mxu1 %v2543_v9  ;;  %1112 = vmatpush.bf16.msrb.mxu3 %v2547_v13  ;;  %v2834_v9 = vld [vmem:[%s3396_s8 + $0x94] sm:$0xf]  ;;  %v2359_v13 = vor.u32 %v2838_v5, %v2358_v4  ;;  %v2830_v19 = vld [vmem:[%s3396_s8 + $0x6c] sm:$0xf0]  ;;  %v2931_v61 = vld [vmem:[%s3396_s8 + $0x39c] sm:$0xf] }
  0x83   : > { %1100 = vmatmul.bf16.vlgmr.msrb.gmra.mxu2 %v3507_v15  ;;  %1074 = vmatmul.bf16.vlgmr.msrb.gmra.mxu0 %v3507_v15  ;;  %v2616_v12 = vld [vmem:[%s3396_s8 + $0x2b0] sm:$0xf0]  ;;  %v2582_v20 = vld [vmem:[%s3396_s8 + $0x250] sm:$0xf]  ;;  %v2752_v62 = vld [vmem:[%s3396_s8 + $0x3b8] sm:$0xf0] }
  0x84   : > { %1118 = vmatpush.bf16.msra.mxu0 %v2519_v14  ;;  %1144 = vmatpush.bf16.msra.mxu2 %v2523_v18  ;;  %v2615_v14 = vor.u32 %v2902_v8, %v2614_v6  ;;  %v2326_v18 = vld [vmem:[%s3396_s8 + $0x50] sm:$0xf]  ;;  %v2619_v21 = vor.u32 %v2898_v11, %v2616_v12  ;;  %v2826_v23 = vld [vmem:[%s3396_s8 + $0x54] sm:$0xf]  ;;  %v2863_v4 = vld [vmem:[%s3396_s8 + $0x174] sm:$0xf0]  ;;  %v2755_v6 = vor.u32 %v2931_v61, %v2752_v62 }
  0x85   : > { %1113 = vmatmul.bf16.vlgmr.msrb.gmra.mxu3 %v3509_v16  ;;  %1087 = vmatmul.bf16.vlgmr.msrb.gmra.mxu1 %v3509_v16  ;;  %v2328_v24 = vld [vmem:[%s3396_s8 + $0x70] sm:$0xf0]  ;;  %v2327_v27 = vor.u32 %v2830_v19, %v2326_v18  ;;  %v2550_v32 = vld [vmem:[%s3396_s8 + $0x210] sm:$0xf]  ;;  %v2718_v5 = vld [vmem:[%s3396_s8 + $0x358] sm:$0xf] }
  0x86   : > { %1131 = vmatpush.bf16.msra.mxu1 %v2775_v17  ;;  %1157 = vmatpush.bf16.msra.mxu3 %v2779_v22  ;;  %v2363_v17 = vor.u32 %v2834_v9, %v2360_v10  ;;  %v2894_v22 = vld [vmem:[%s3396_s8 + $0x26c] sm:$0xf0]  ;;  %v2890_v25 = vld [vmem:[%s3396_s8 + $0x254] sm:$0xf]  ;;  %v2331_v31 = vor.u32 %v2826_v23, %v2328_v24  ;;  %v2859_v8 = vld [vmem:[%s3396_s8 + $0x15c] sm:$0xf] }
  0x87   : > { %v2584_v26 = vld [vmem:[%s3396_s8 + $0x270] sm:$0xf0]  ;;  %v2886_v33 = vld [vmem:[%s3396_s8 + $0x22c] sm:$0xf0]  ;;  %v2464_v9 = vld [vmem:[%s3396_s8 + $0x178] sm:$0xf0] }
  0x88   : > { %1119 = vmatpush.bf16.msra.mxu0 %v2487_v28  ;;  %1145 = vmatpush.bf16.msra.mxu2 %v2491_v30  ;;  %v2294_v28 = vld [vmem:[%s3396_s8 + $0x10] sm:$0xf]  ;;  %v2583_v30 = vor.u32 %v2894_v22, %v2582_v20  ;;  %v2587_v35 = vor.u32 %v2890_v25, %v2584_v26  ;;  %v2296_v36 = vld [vmem:[%s3396_s8 + $0x30] sm:$0xf0]  ;;  %v2923_v10 = vld [vmem:[%s3396_s8 + $0x35c] sm:$0xf] }
  0x89   : > { %v2882_v37 = vld [vmem:[%s3396_s8 + $0x214] sm:$0xf]  ;;  %v2720_v11 = vld [vmem:[%s3396_s8 + $0x378] sm:$0xf0]  ;;  %v2855_v18 = vld [vmem:[%s3396_s8 + $0x134] sm:$0xf0] }
  0x8a   : > { %1132 = vmatpush.bf16.msra.mxu1 %v2743_v29  ;;  %1158 = vmatpush.bf16.msra.mxu3 %v2747_v34  ;;  %v2822_v29 = vld [vmem:[%s3396_s8 + $0x2c] sm:$0xf0]  ;;  %v2818_v34 = vld [vmem:[%s3396_s8 + $0x14] sm:$0xf]  ;;  %v2686_v19 = vld [vmem:[%s3396_s8 + $0x318] sm:$0xf]  ;;  %v2723_v20 = vor.u32 %v2923_v10, %v2720_v11 }
  0x8b   : > { %v2552_v38 = vld [vmem:[%s3396_s8 + $0x230] sm:$0xf0]  ;;  %v2299_v47 = vor.u32 %v2818_v34, %v2296_v36  ;;  %v2851_v22 = vld [vmem:[%s3396_s8 + $0x11c] sm:$0xf] }
  0x8c   : > { %1120 = vmatpush.bf16.msra.mxu0 %v2455_v40  ;;  %1146 = vmatpush.bf16.msra.mxu2 %v2459_v42  ;;  %v2879_v40 = vld [vmem:[%s3396_s8 + $0x1f4] sm:$0xf0]  ;;  %v2295_v42 = vor.u32 %v2822_v29, %v2294_v28  ;;  %v2555_v50 = vor.u32 %v2882_v37, %v2552_v38  ;;  %v2432_v23 = vld [vmem:[%s3396_s8 + $0x138] sm:$0xf0] }
  0x8d   : > { %v2527_v51 = vor.u32 %v2879_v40, %v2526_v39  ;;  %v2915_v24 = vld [vmem:[%s3396_s8 + $0x31c] sm:$0xf]  ;;  %v2435_v28 = vor.u32 %v2851_v22, %v2432_v23  ;;  %v2398_v29 = vld [vmem:[%s3396_s8 + $0xd8] sm:$0xf] }
  0x8e   : > { %1133 = vmatpush.bf16.msra.mxu1 %v2711_v41  ;;  %1159 = vmatpush.bf16.msra.mxu3 %v2715_v46  ;;  %v2782_v41 = vld [vmem:[%s3396_s8 + $0x3d8] sm:$0xf]  ;;  %v2551_v46 = vor.u32 %v2886_v33, %v2550_v32  ;;  %v2688_v25 = vld [vmem:[%s3396_s8 + $0x338] sm:$0xf0] }
  0x8f   : > { %v2691_v32 = vor.u32 %v2915_v24, %v2688_v25  ;;  %v2911_v33 = vld [vmem:[%s3396_s8 + $0x2f4] sm:$0xf0]  ;;  %v2843_v34 = vld [vmem:[%s3396_s8 + $0xdc] sm:$0xf] }
  0x90   : > { %1121 = vmatpush.bf16.msra.mxu0 %v2423_v52  ;;  %1147 = vmatpush.bf16.msra.mxu2 %v2427_v54  ;;  %v2783_v52 = vor.u32 %v2943_v43, %v2782_v41  ;;  %v2494_v54 = vld [vmem:[%s3396_s8 + $0x198] sm:$0xf]  ;;  %v2907_v36 = vld [vmem:[%s3396_s8 + $0x2dc] sm:$0xf] }
  0x91   : > { %v2495_v63 = vor.u32 %v2871_v55, %v2494_v54  ;;  %v2656_v37 = vld [vmem:[%s3396_s8 + $0x2f8] sm:$0xf0]  ;;  %v2366_v41 = vld [vmem:[%s3396_s8 + $0x98] sm:$0xf] }
  0x92   : > { %1134 = vmatpush.bf16.msra.mxu1 %v2679_v53  ;;  %1160 = vmatpush.bf16.msra.mxu3 %v2683_v58  ;;  %v2531_v53 = vor.u32 %v2875_v44, %v2528_v45  ;;  %v2935_v58 = vld [vmem:[%s3396_s8 + $0x3b4] sm:$0xf0]  ;;  %v2659_v44 = vor.u32 %v2907_v36, %v2656_v37  ;;  %v2899_v48 = vld [vmem:[%s3396_s8 + $0x29c] sm:$0xf] }
  0x93   : > { %v2622_v43 = vld [vmem:[%s3396_s8 + $0x298] sm:$0xf]  ;;  %v2624_v49 = vld [vmem:[%s3396_s8 + $0x2b8] sm:$0xf0] }
  0x94   : > { %1122 = vmatpush.bf16.msra.mxu0 %v2391_v0  ;;  %1148 = vmatpush.bf16.msra.mxu2 %v2395_v3  ;;  %v2751_v0 = vor.u32 %v2935_v58, %v2750_v56  ;;  %v2462_v3 = vld [vmem:[%s3396_s8 + $0x158] sm:$0xf]  ;;  %v2627_v56 = vor.u32 %v2899_v48, %v2624_v49  ;;  %v2827_v58 = vld [vmem:[%s3396_s8 + $0x5c] sm:$0xf] }
  0x95   : > { %v2463_v12 = vor.u32 %v2863_v4, %v2462_v3  ;;  %v2903_v45 = vld [vmem:[%s3396_s8 + $0x2b4] sm:$0xf0]  ;;  %v2592_v61 = vld [vmem:[%s3396_s8 + $0x278] sm:$0xf0] }
  0x96   : > { %1135 = vmatpush.bf16.msra.mxu1 %v2647_v2  ;;  %1161 = vmatpush.bf16.msra.mxu3 %v2651_v7  ;;  %v2499_v2 = vor.u32 %v2867_v59, %v2496_v60  ;;  %v2927_v7 = vld [vmem:[%s3396_s8 + $0x374] sm:$0xf0]  ;;  %v2336_v59 = vld [vmem:[%s3396_s8 + $0x78] sm:$0xf0] }
  0x97   : > { %v2831_v54 = vld [vmem:[%s3396_s8 + $0x74] sm:$0xf0]  ;;  %v2891_v60 = vld [vmem:[%s3396_s8 + $0x25c] sm:$0xf] }
  0x98   : > { %1123 = vmatpush.bf16.msra.mxu0 %v2359_v13  ;;  %1149 = vmatpush.bf16.msra.mxu2 %v2363_v17  ;;  %v2719_v13 = vor.u32 %v2927_v7, %v2718_v5  ;;  %v2430_v17 = vld [vmem:[%s3396_s8 + $0x118] sm:$0xf]  ;;  %v2595_v5 = vor.u32 %v2891_v60, %v2592_v61  ;;  %v2819_v7 = vld [vmem:[%s3396_s8 + $0x1c] sm:$0xf] }
  0x99   : > { %v2431_v26 = vor.u32 %v2855_v18, %v2430_v17  ;;  %v2590_v55 = vld [vmem:[%s3396_s8 + $0x258] sm:$0xf]  ;;  %v2560_v10 = vld [vmem:[%s3396_s8 + $0x238] sm:$0xf0] }
  0x9a   : > { %1136 = vmatpush.bf16.msra.mxu1 %v2615_v14  ;;  %1162 = vmatpush.bf16.msra.mxu3 %v2619_v21  ;;  %v2467_v14 = vor.u32 %v2859_v8, %v2464_v9  ;;  %v2919_v21 = vld [vmem:[%s3396_s8 + $0x334] sm:$0xf0]  ;;  %v2304_v8 = vld [vmem:[%s3396_s8 + $0x38] sm:$0xf0] }
  0x9b   : > { %v2823_v3 = vld [vmem:[%s3396_s8 + $0x34] sm:$0xf0]  ;;  %v2883_v9 = vld [vmem:[%s3396_s8 + $0x21c] sm:$0xf] }
  0x9c   : > { %1124 = vmatpush.bf16.msra.mxu0 %v2327_v27  ;;  %1150 = vmatpush.bf16.msra.mxu2 %v2331_v31  ;;  %v2687_v27 = vor.u32 %v2919_v21, %v2686_v19  ;;  %v2654_v31 = vld [vmem:[%s3396_s8 + $0x2d8] sm:$0xf] }
  0x9d   : > { %v2655_v39 = vor.u32 %v2911_v33, %v2654_v31  ;;  %v2558_v4 = vld [vmem:[%s3396_s8 + $0x218] sm:$0xf] }
  0x9e   : > { %1137 = vmatpush.bf16.msra.mxu1 %v2583_v30  ;;  %1163 = vmatpush.bf16.msra.mxu3 %v2587_v35  ;;  %v2847_v30 = vld [vmem:[%s3396_s8 + $0xf4] sm:$0xf0]  ;;  %v2400_v35 = vld [vmem:[%s3396_s8 + $0xf8] sm:$0xf0] }
  0x9f   : > { %v2399_v38 = vor.u32 %v2847_v30, %v2398_v29  ;;  %v2403_v40 = vor.u32 %v2843_v34, %v2400_v35 }
  0xa0   : > { %1125 = vmatpush.bf16.msra.mxu0 %v2295_v42  ;;  %1151 = vmatpush.bf16.msra.mxu2 %v2299_v47  ;;  %v2839_v42 = vld [vmem:[%s3396_s8 + $0xb4] sm:$0xf0]  ;;  %v2368_v47 = vld [vmem:[%s3396_s8 + $0xb8] sm:$0xf0] }
  0xa2   : > { %1138 = vmatpush.bf16.msra.mxu1 %v2551_v46  ;;  %1164 = vmatpush.bf16.msra.mxu3 %v2555_v50  ;;  %v2835_v46 = vld [vmem:[%s3396_s8 + $0x9c] sm:$0xf]  ;;  %v2367_v50 = vor.u32 %v2839_v42, %v2366_v41 }
  0xa3   : > { %1152 = vmatmul.bf16.vlgmr.msra.gmra.mxu2 %v3507_v15  ;;  %1126 = vmatmul.bf16.vlgmr.msra.gmra.mxu0 %v3507_v15 }
  0xa4   : > { %1170 = vmatpush.bf16.msrb.mxu0 %v2527_v51  ;;  %1196 = vmatpush.bf16.msrb.mxu2 %v2531_v53  ;;  %v2623_v51 = vor.u32 %v2903_v45, %v2622_v43  ;;  %v2334_v53 = vld [vmem:[%s3396_s8 + $0x58] sm:$0xf] }
  0xa5   : > { %1165 = vmatmul.bf16.vlgmr.msra.gmra.mxu3 %v3509_v16  ;;  %1139 = vmatmul.bf16.vlgmr.msra.gmra.mxu1 %v3509_v16  ;;  %v2335_v62 = vor.u32 %v2831_v54, %v2334_v53 }
  0xa6   : > { %1183 = vmatpush.bf16.msrb.mxu1 %v2783_v52  ;;  %1209 = vmatpush.bf16.msrb.mxu3 %v2787_v57  ;;  %v2371_v52 = vor.u32 %v2835_v46, %v2368_v47  ;;  %v2895_v57 = vld [vmem:[%s3396_s8 + $0x274] sm:$0xf0] }
  0xa8   : > { %1171 = vmatpush.bf16.msrb.mxu0 %v2495_v63  ;;  %1197 = vmatpush.bf16.msrb.mxu2 %v2499_v2  ;;  %v2591_v63 = vor.u32 %v2895_v57, %v2590_v55  ;;  %v2302_v2 = vld [vmem:[%s3396_s8 + $0x18] sm:$0xf] }
  0xa9   : > { %v2303_v11 = vor.u32 %v2823_v3, %v2302_v2 }
  0xaa   : > { %1184 = vmatpush.bf16.msrb.mxu1 %v2751_v0  ;;  %1210 = vmatpush.bf16.msrb.mxu3 %v2755_v6  ;;  %v2339_v0 = vor.u32 %v2827_v58, %v2336_v59  ;;  %v2887_v6 = vld [vmem:[%s3396_s8 + $0x234] sm:$0xf0] }
  0xac   : > { %1172 = vmatpush.bf16.msrb.mxu0 %v2463_v12  ;;  %1198 = vmatpush.bf16.msrb.mxu2 %v2467_v14  ;;  %v2559_v12 = vor.u32 %v2887_v6, %v2558_v4  ;;  %v2563_v14 = vor.u32 %v2883_v9, %v2560_v10 }
  0xae   : > { %1185 = vmatpush.bf16.msrb.mxu1 %v2719_v13  ;;  %1211 = vmatpush.bf16.msrb.mxu3 %v2723_v20  ;;  %v2307_v13 = vor.u32 %v2819_v7, %v2304_v8 }
  0xb0   : > { %1173 = vmatpush.bf16.msrb.mxu0 %v2431_v26  ;;  %1199 = vmatpush.bf16.msrb.mxu2 %v2435_v28 }
  0xb2   : > { %1186 = vmatpush.bf16.msrb.mxu1 %v2687_v27  ;;  %1212 = vmatpush.bf16.msrb.mxu3 %v2691_v32 }
  0xb4   : > { %1174 = vmatpush.bf16.msrb.mxu0 %v2399_v38  ;;  %1200 = vmatpush.bf16.msrb.mxu2 %v2403_v40 }
  0xb6   : > { %1187 = vmatpush.bf16.msrb.mxu1 %v2655_v39  ;;  %1213 = vmatpush.bf16.msrb.mxu3 %v2659_v44 }
  0xb8   : > { %1175 = vmatpush.bf16.msrb.mxu0 %v2367_v50  ;;  %1201 = vmatpush.bf16.msrb.mxu2 %v2371_v52 }
  0xba   : > { %1188 = vmatpush.bf16.msrb.mxu1 %v2623_v51  ;;  %1214 = vmatpush.bf16.msrb.mxu3 %v2627_v56 }
  0xbc   : > { %1176 = vmatpush.bf16.msrb.mxu0 %v2335_v62  ;;  %1202 = vmatpush.bf16.msrb.mxu2 %v2339_v0 }
  0xbe   : > { %1189 = vmatpush.bf16.msrb.mxu1 %v2591_v63  ;;  %1215 = vmatpush.bf16.msrb.mxu3 %v2595_v5 }
  0xc0   : > { %1177 = vmatpush.bf16.msrb.mxu0 %v2303_v11  ;;  %1203 = vmatpush.bf16.msrb.mxu2 %v2307_v13 }
  0xc2   : > { %1190 = vmatpush.bf16.msrb.mxu1 %v2559_v12  ;;  %1216 = vmatpush.bf16.msrb.mxu3 %v2563_v14 }
  0xc3   : > { %1178 = vmatmul.bf16.vlgmr.msrb.gmra.mxu0 %v3507_v15  ;;  %1204 = vmatmul.bf16.vlgmr.msrb.gmra.mxu2 %v3507_v15 }
  0xc5   : > { %1191 = vmatmul.bf16.vlgmr.msrb.gmra.mxu1 %v3509_v16  ;;  %1217 = vmatmul.bf16.vlgmr.msrb.gmra.mxu3 %v3509_v16 }
  0xe4   : > { %v1023_v17 = vpop.f32.mrf.mxu0  ;;  %v1036_v18 = vpop.f32.mrf.mxu1 }
  0xe5   : > { %v1037_v19 = vadd.f32 %v1036_v18, %v1023_v17 }
  0xe8   : > { %v1049_v20 = vpop.f32.mrf.mxu2  ;;  %v1062_v21 = vpop.f32.mrf.mxu3 }
  0xe9   : > { %v1063_v22 = vadd.f32 %v1062_v21, %v1049_v20 }
  0xec   : > { %v1025_v23 = vpop.f32.mrf.mxu0  ;;  %v1038_v24 = vpop.f32.mrf.mxu1 }
  0xf0   : > { %v1051_v25 = vpop.f32.mrf.mxu2  ;;  %v1064_v26 = vpop.f32.mrf.mxu3 }
 0x100   : > { %v1075_v27 = vpop.f32.mrf.mxu0 }
 0x102   : > { %v1088_v28 = vpop.f32.mrf.mxu1 }
 0x103   : > { %v1089_v29 = vadd.f32 %v1088_v28, %v1075_v27 }
 0x106   : > { %v1101_v30 = vpop.f32.mrf.mxu2 }
 0x108   : > { %v1114_v31 = vpop.f32.mrf.mxu3  ;;  %v1077_v33 = vpop.f32.mrf.mxu0 }
 0x109   : > { %v1115_v32 = vadd.f32 %v1114_v31, %v1101_v30 }
 0x10a   : > { %v1090_v15 = vpop.f32.mrf.mxu1 }
 0x10e   : > { %v1103_v34 = vpop.f32.mrf.mxu2 }
 0x110   : > { %v1116_v16 = vpop.f32.mrf.mxu3 }
 0x120   : > { %v1127_v35 = vpop.f32.mrf.mxu0 }
 0x122   : > { %v1140_v36 = vpop.f32.mrf.mxu1 }
 0x123   : > { %v1141_v37 = vadd.f32 %v1140_v36, %v1127_v35 }
 0x126   : > { %v1153_v38 = vpop.f32.mrf.mxu2 }
 0x128   : > { %v1166_v39 = vpop.f32.mrf.mxu3  ;;  %v1129_v41 = vpop.f32.mrf.mxu0 }
 0x129   : > { %v1167_v40 = vadd.f32 %v1166_v39, %v1153_v38 }
 0x12a   : > { %v1142_v42 = vpop.f32.mrf.mxu1 }
 0x12e   : > { %v1155_v43 = vpop.f32.mrf.mxu2 }
 0x130   : > { %v1168_v44 = vpop.f32.mrf.mxu3 }
 0x140   : > { %v1179_v45 = vpop.f32.mrf.mxu0 }
 0x142   : > { %v1192_v46 = vpop.f32.mrf.mxu1 }
 0x143   : > { %v1193_v47 = vadd.f32 %v1192_v46, %v1179_v45 }
 0x146   : > { %v1205_v48 = vpop.f32.mrf.mxu2 }
 0x148   : > { %v1218_v49 = vpop.f32.mrf.mxu3  ;;  %v1181_v50 = vpop.f32.mrf.mxu0 }
 0x149   : > { %v1219_v51 = vadd.f32 %v1218_v49, %v1205_v48 }
 0x14a   : > { %v1194_v52 = vpop.f32.mrf.mxu1 }
 0x14c   : > { %1225 = sbr.rel (%p2263_p3) target bundleno = 348 (0x15c), region = 48 }
 0x14e   : > { %v1207_v53 = vpop.f32.mrf.mxu2 }
 0x150   : > { %v1220_v54 = vpop.f32.mrf.mxu3 }
 0x151   : > { %v3265_v55 = vmov 0.0   ;;  %v3266_v56 = vmov -inf  }
 0x152   : > { %1226 = vst [vmem:[#allocation2 + $0x30] sm:$0xff] %v3265_v55 }
 0x153   : > { %1227 = vst [vmem:[#allocation2] sm:$0xff] %v3265_v55 }
 0x154   : > { %1228 = vst [vmem:[#allocation2 + $0x18] sm:$0xff] %v3265_v55 }
 0x155   : > { %1229 = vst [vmem:[#allocation2 + $0x10] sm:$0xff] %v3265_v55 }
 0x156   : > { %1230 = vst [vmem:[#allocation2 + $0x8] sm:$0xff] %v3265_v55 }
 0x157   : > { %1231 = vst [vmem:[#allocation2 + $0x20] sm:$0xff] %v3265_v55 }
 0x158   : > { %1232 = vst [vmem:[#allocation2 + $0x28] sm:$0xff] %v3265_v55 }
 0x159   : > { %1233 = vst [vmem:[#allocation2 + $0x38] sm:$0xff] %v3265_v55 }
 0x15a   : > { %1234 = vst [vmem:[#allocation3] sm:$0xff] %v3266_v56 }
 0x15b   : > { %1235 = vst [vmem:[#allocation3 + $0x8] sm:$0xff] %v3266_v56 }
 0x15c PF: > { %v1236_v57 = vld [vmem:[#allocation2 + $0x30] sm:$0xff]  ;;  %v1237_v58 = vld [vmem:[#allocation2] sm:$0xff]  ;;  %v1238_v59 = vld [vmem:[#allocation2 + $0x18] sm:$0xff]  ;;  %v1262_v7 = vunpack.c.l.bf16 %v3495_v1  ;;  %v1263_v10 = vunpack.c.h.bf16 %v3495_v1  ;;  %p2789_p1 = scmp.ne.s32.totalorder %s3314_s19, 3 }
 0x15d   : > { %v1244_v60 = vadd.f32 %v1236_v57, %v1037_v19  ;;  %v1245_v61 = vadd.f32 %v1237_v58, %v1063_v22  ;;  %v1246_v62 = vadd.f32 %v1238_v59, %v1089_v29  ;;  %v1239_v63 = vld [vmem:[#allocation2 + $0x10] sm:$0xff]  ;;  %v1240_v0 = vld [vmem:[#allocation2 + $0x8] sm:$0xff]  ;;  %s3268_s20 = smov (!%p2789_p1), 64   ;;  %s3269_s29 = smov (!%p2789_p1), 32  }
 0x15e   : > { %v1241_v2 = vld [vmem:[#allocation2 + $0x20] sm:$0xff]  ;;  %v1247_v3 = vadd.f32 %v1239_v63, %v1115_v32  ;;  %v1248_v5 = vadd.f32 %v1240_v0, %v1141_v37  ;;  %s3270_s9 = smov (!%p2789_p1), 96  }
 0x15f   : > { %v1242_v4 = vld [vmem:[#allocation2 + $0x28] sm:$0xff]  ;;  %1252 = vst [vmem:[#allocation2 + $0x30] sm:$0xff] %v1244_v60  ;;  %v1249_v8 = vadd.f32 %v1241_v2, %v1167_v40 }
 0x160   : > { %v1243_v6 = vld [vmem:[#allocation2 + $0x38] sm:$0xff]  ;;  %1253 = vst [vmem:[#allocation2] sm:$0xff] %v1245_v61  ;;  %v1250_v11 = vadd.f32 %v1242_v4, %v1193_v47 }
 0x161   : > { %v1260_v9 = vld [vmem:[#allocation3] sm:$0xff]  ;;  %1254 = vst [vmem:[#allocation2 + $0x18] sm:$0xff] %v1246_v62  ;;  %v1251_v13 = vadd.f32 %v1243_v6, %v1219_v51 }
 0x162   : > { %v1261_v12 = vld [vmem:[#allocation3 + $0x8] sm:$0xff]  ;;  %1255 = vst [vmem:[#allocation2 + $0x10] sm:$0xff] %v1247_v3  ;;  %v1264_v14 = vmax.f32 %v1260_v9, %v1262_v7 }
 0x163   : > { %1256 = vst [vmem:[#allocation2 + $0x8] sm:$0xff] %v1248_v5  ;;  %v1265_v17 = vmax.f32 %v1261_v12, %v1263_v10 }
 0x164   : > { %1257 = vst [vmem:[#allocation2 + $0x20] sm:$0xff] %v1249_v8  ;;  %1271 = sbr.rel (%p2789_p1) target bundleno = 3745 (0xea1), region = 52 }
 0x165   : > { %1258 = vst [vmem:[#allocation2 + $0x28] sm:$0xff] %v1250_v11 }
 0x166   : > { %1259 = vst [vmem:[#allocation2 + $0x38] sm:$0xff] %v1251_v13 }
 0x167   : > { %1266 = vst [vmem:[#allocation3] sm:$0xff] %v1264_v14 }
 0x168   : > { %1267 = vst [vmem:[#allocation3 + $0x8] sm:$0xff] %v1265_v17 }
 0x169   : > { %v1335_v18 = vld [vmem:[#allocation9 + $0x178] sm:$0xff]  ;;  %v1334_v20 = vld [vmem:[#allocation9 + $0x170] sm:$0xff]  ;;  %v1333_v23 = vld [vmem:[#allocation9 + $0x168] sm:$0xff]  ;;  %vm1453_vm4 = vcmask 261120  }
 0x16a   : > { %v1303_v19 = vld [vmem:[#allocation9 + $0x78] sm:$0xff]  ;;  %1413 = vmatpush.msra.mxu2 %v1335_v18  ;;  %v1302_v21 = vld [vmem:[#allocation9 + $0x70] sm:$0xff]  ;;  %v1301_v25 = vld [vmem:[#allocation9 + $0x68] sm:$0xff] }
 0x16b   : > { %1373 = vmatpush.msra.mxu0 %v1303_v19  ;;  %v1351_v1 = vld [vmem:[#allocation9 + $0x1f8] sm:$0xff]  ;;  %v1350_v24 = vld [vmem:[#allocation9 + $0x1f0] sm:$0xff]  ;;  %v1349_v27 = vld [vmem:[#allocation9 + $0x1e8] sm:$0xff] }
 0x16c   : > { %v1319_v22 = vld [vmem:[#allocation9 + $0xf8] sm:$0xff]  ;;  %1433 = vmatpush.msra.mxu3 %v1351_v1  ;;  %1414 = vmatpush.msra.mxu2 %v1334_v20  ;;  %v1318_v26 = vld [vmem:[#allocation9 + $0xf0] sm:$0xff]  ;;  %v1332_v28 = vld [vmem:[#allocation9 + $0x160] sm:$0xff] }
 0x16d   : > { %1393 = vmatpush.msra.mxu1 %v1319_v22  ;;  %1374 = vmatpush.msra.mxu0 %v1302_v21  ;;  %v1300_v29 = vld [vmem:[#allocation9 + $0x60] sm:$0xff]  ;;  %v1317_v30 = vld [vmem:[#allocation9 + $0xe8] sm:$0xff]  ;;  %v1331_v33 = vld [vmem:[#allocation9 + $0x158] sm:$0xff] }
 0x16e   : > { %1434 = vmatpush.msra.mxu3 %v1350_v24  ;;  %1415 = vmatpush.msra.mxu2 %v1333_v23  ;;  %v1348_v31 = vld [vmem:[#allocation9 + $0x1e0] sm:$0xff]  ;;  %v1299_v15 = vld [vmem:[#allocation9 + $0x58] sm:$0xff]  ;;  %v1330_v35 = vld [vmem:[#allocation9 + $0x150] sm:$0xff] }
 0x16f   : > { %1394 = vmatpush.msra.mxu1 %v1318_v26  ;;  %1375 = vmatpush.msra.mxu0 %v1301_v25  ;;  %v1316_v32 = vld [vmem:[#allocation9 + $0xe0] sm:$0xff]  ;;  %v1347_v34 = vld [vmem:[#allocation9 + $0x1d8] sm:$0xff]  ;;  %v1298_v36 = vld [vmem:[#allocation9 + $0x50] sm:$0xff] }
 0x170   : > { %1435 = vmatpush.msra.mxu3 %v1349_v27  ;;  %1416 = vmatpush.msra.mxu2 %v1332_v28  ;;  %v1315_v16 = vld [vmem:[#allocation9 + $0xd8] sm:$0xff]  ;;  %v1346_v37 = vld [vmem:[#allocation9 + $0x1d0] sm:$0xff]  ;;  %v1329_v39 = vld [vmem:[#allocation9 + $0x148] sm:$0xff] }
 0x171   : > { %1395 = vmatpush.msra.mxu1 %v1317_v30  ;;  %1376 = vmatpush.msra.mxu0 %v1300_v29  ;;  %v1314_v38 = vld [vmem:[#allocation9 + $0xd0] sm:$0xff]  ;;  %v1297_v40 = vld [vmem:[#allocation9 + $0x48] sm:$0xff]  ;;  %v1328_v43 = vld [vmem:[#allocation9 + $0x140] sm:$0xff] }
 0x172   : > { %1436 = vmatpush.msra.mxu3 %v1348_v31  ;;  %1417 = vmatpush.msra.mxu2 %v1331_v33  ;;  %v1345_v41 = vld [vmem:[#allocation9 + $0x1c8] sm:$0xff]  ;;  %v1296_v44 = vld [vmem:[#allocation9 + $0x40] sm:$0xff]  ;;  %v1327_v47 = vld [vmem:[#allocation9 + $0x138] sm:$0xff] }
 0x173   : > { %1396 = vmatpush.msra.mxu1 %v1316_v32  ;;  %1377 = vmatpush.msra.mxu0 %v1299_v15  ;;  %v1313_v42 = vld [vmem:[#allocation9 + $0xc8] sm:$0xff]  ;;  %v1344_v45 = vld [vmem:[#allocation9 + $0x1c0] sm:$0xff]  ;;  %v1295_v48 = vld [vmem:[#allocation9 + $0x38] sm:$0xff] }
 0x174   : > { %1437 = vmatpush.msra.mxu3 %v1347_v34  ;;  %1418 = vmatpush.msra.mxu2 %v1330_v35  ;;  %v1312_v46 = vld [vmem:[#allocation9 + $0xc0] sm:$0xff]  ;;  %v1343_v49 = vld [vmem:[#allocation9 + $0x1b8] sm:$0xff]  ;;  %v1326_v51 = vld [vmem:[#allocation9 + $0x130] sm:$0xff]  ;;  %v3267_v35 = vmov 0.0  }
 0x175   : > { %1397 = vmatpush.msra.mxu1 %v1315_v16  ;;  %1378 = vmatpush.msra.mxu0 %v1298_v36  ;;  %v1311_v50 = vld [vmem:[#allocation9 + $0xb8] sm:$0xff]  ;;  %v1294_v52 = vld [vmem:[#allocation9 + $0x30] sm:$0xff]  ;;  %v1325_v55 = vld [vmem:[#allocation9 + $0x128] sm:$0xff] }
 0x176   : > { %1438 = vmatpush.msra.mxu3 %v1346_v37  ;;  %1419 = vmatpush.msra.mxu2 %v1329_v39  ;;  %v1342_v53 = vld [vmem:[#allocation9 + $0x1b0] sm:$0xff]  ;;  %v1293_v56 = vld [vmem:[#allocation9 + $0x28] sm:$0xff]  ;;  %v1324_v57 = vld [vmem:[#allocation9 + $0x120] sm:$0xff] }
 0x177   : > { %1398 = vmatpush.msra.mxu1 %v1314_v38  ;;  %1379 = vmatpush.msra.mxu0 %v1297_v40  ;;  %v1310_v54 = vld [vmem:[#allocation9 + $0xb0] sm:$0xff]  ;;  %v1341_v58 = vld [vmem:[#allocation9 + $0x1a8] sm:$0xff]  ;;  %v1292_v59 = vld [vmem:[#allocation9 + $0x20] sm:$0xff] }
 0x178   : > { %1439 = vmatpush.msra.mxu3 %v1345_v41  ;;  %1420 = vmatpush.msra.mxu2 %v1328_v43  ;;  %v1309_v60 = vld [vmem:[#allocation9 + $0xa8] sm:$0xff]  ;;  %v1323_v61 = vld [vmem:[#allocation9 + $0x118] sm:$0xff]  ;;  %v1340_v62 = vld [vmem:[#allocation9 + $0x1a0] sm:$0xff] }
 0x179   : > { %1399 = vmatpush.msra.mxu1 %v1313_v42  ;;  %1380 = vmatpush.msra.mxu0 %v1296_v44  ;;  %v1291_v63 = vld [vmem:[#allocation9 + $0x18] sm:$0xff]  ;;  %v1308_v0 = vld [vmem:[#allocation9 + $0xa0] sm:$0xff]  ;;  %v1272_v3 = vld [vmem:[#allocation2 + $0x30] sm:$0xff] }
 0x17a   : > { %1440 = vmatpush.msra.mxu3 %v1344_v45  ;;  %1421 = vmatpush.msra.mxu2 %v1327_v47  ;;  %v1339_v2 = vld [vmem:[#allocation9 + $0x198] sm:$0xff]  ;;  %v1322_v4 = vld [vmem:[#allocation9 + $0x110] sm:$0xff]  ;;  %v1276_v6 = vld [vmem:[#allocation2 + $0x8] sm:$0xff] }
 0x17b   : > { %1400 = vmatpush.msra.mxu1 %v1312_v46  ;;  %1381 = vmatpush.msra.mxu0 %v1295_v48  ;;  %v1274_v5 = vld [vmem:[#allocation2 + $0x18] sm:$0xff]  ;;  %v1278_v7 = vld [vmem:[#allocation2 + $0x28] sm:$0xff]  ;;  %v1290_v8 = vld [vmem:[#allocation9 + $0x10] sm:$0xff] }
 0x17c   : > { %1441 = vmatpush.msra.mxu3 %v1343_v49  ;;  %1422 = vmatpush.msra.mxu2 %v1326_v51  ;;  %v1307_v9 = vld [vmem:[#allocation9 + $0x98] sm:$0xff]  ;;  %v1273_v10 = vld [vmem:[#allocation2] sm:$0xff]  ;;  %v1321_v11 = vld [vmem:[#allocation9 + $0x108] sm:$0xff]  ;;  %v1280_v20 = vmax.f32 %v1272_v3, %v1274_v5  ;;  %v1282_v1 = vmax.f32 %v1276_v6, %v1278_v7 }
 0x17d   : > { %1401 = vmatpush.msra.mxu1 %v1311_v50  ;;  %1382 = vmatpush.msra.mxu0 %v1294_v52  ;;  %v1275_v12 = vld [vmem:[#allocation2 + $0x10] sm:$0xff]  ;;  %v1277_v13 = vld [vmem:[#allocation2 + $0x20] sm:$0xff]  ;;  %v1279_v14 = vld [vmem:[#allocation2 + $0x38] sm:$0xff] }
 0x17e   : > { %1442 = vmatpush.msra.mxu3 %v1342_v53  ;;  %1423 = vmatpush.msra.mxu2 %v1325_v55  ;;  %v1338_v17 = vld [vmem:[#allocation9 + $0x190] sm:$0xff]  ;;  %v1289_v18 = vld [vmem:[#allocation9 + $0x8] sm:$0xff]  ;;  %v1281_v23 = vmax.f32 %v1273_v10, %v1275_v12  ;;  %v1283_v24 = vmax.f32 %v1277_v13, %v1279_v14  ;;  %v1320_v25 = vld [vmem:[#allocation9 + $0x100] sm:$0xff]  ;;  %v1284_v29 = vmax.f32 %v1280_v20, %v1282_v1 }
 0x17f   : > { %1402 = vmatpush.msra.mxu1 %v1310_v54  ;;  %1383 = vmatpush.msra.mxu0 %v1293_v56  ;;  %v1306_v19 = vld [vmem:[#allocation9 + $0x90] sm:$0xff]  ;;  %v1337_v21 = vld [vmem:[#allocation9 + $0x188] sm:$0xff]  ;;  %v1288_v26 = vld [vmem:[#allocation9] sm:$0xff] }
 0x180   : > { %1443 = vmatpush.msra.mxu3 %v1341_v58  ;;  %1424 = vmatpush.msra.mxu2 %v1324_v57  ;;  %v1305_v22 = vld [vmem:[#allocation9 + $0x88] sm:$0xff]  ;;  %v1286_v27 = vld [vmem:[#allocation3] sm:$0xff]  ;;  %v1285_v33 = vmax.f32 %v1281_v23, %v1283_v24  ;;  %v3694_v15 = vld [vmem:[#allocation9 + $0x218] sm:$0xff] }
 0x181   : > { %1403 = vmatpush.msra.mxu1 %v1309_v60  ;;  %1384 = vmatpush.msra.mxu0 %v1292_v59  ;;  %v1336_v28 = vld [vmem:[#allocation9 + $0x180] sm:$0xff]  ;;  %v1287_v30 = vld [vmem:[#allocation3 + $0x8] sm:$0xff]  ;;  %v3697_v34 = vld [vmem:[#allocation9 + $0x210] sm:$0xff] }
 0x182   : > { %1444 = vmatpush.msra.mxu3 %v1340_v62  ;;  %1425 = vmatpush.msra.mxu2 %v1323_v61  ;;  %v3692_v31 = vld [vmem:[#allocation9 + $0x220] sm:$0xff]  ;;  %v3701_v16 = vld [vmem:[#allocation9 + $0x208] sm:$0xff]  ;;  %v1363_v5 = vld [vmem:[#allocation9 + $0x258] sm:$0xff] }
 0x183   : > { %1404 = vmatpush.msra.mxu1 %v1308_v0  ;;  %1385 = vmatpush.msra.mxu0 %v1291_v63  ;;  %v1304_v32 = vld [vmem:[#allocation9 + $0x80] sm:$0xff]  ;;  %v1359_v7 = vld [vmem:[#allocation9 + $0x238] sm:$0xff]  ;;  %v1361_v10 = vld [vmem:[#allocation9 + $0x248] sm:$0xff] }
 0x184   : > { %1445 = vmatpush.msra.mxu3 %v1339_v2  ;;  %1426 = vmatpush.msra.mxu2 %v1322_v4  ;;  %v3016_v36 = vld [vmem:[#allocation9 + $0x200] ss:$0 sm:$0xff] }
 0x185   : > { %1405 = vmatpush.msra.mxu1 %v1307_v9  ;;  %1386 = vmatpush.msra.mxu0 %v1290_v8  ;;  %v1364_v4 = vld [vmem:[#allocation9 + $0x260] sm:$0xff]  ;;  %v1362_v8 = vld [vmem:[#allocation9 + $0x250] sm:$0xff] }
 0x186   : > { %1446 = vmatpush.msra.mxu3 %v1338_v17  ;;  %1427 = vmatpush.msra.mxu2 %v1321_v11  ;;  %v1360_v6 = vld [vmem:[#allocation9 + $0x240] sm:$0xff]  ;;  %v1358_v9 = vld [vmem:[#allocation9 + $0x230] sm:$0xff]  ;;  %v1357_v11 = vld [vmem:[#allocation9 + $0x228] sm:$0xff] }
 0x187   : > { %1406 = vmatpush.msra.mxu1 %v1306_v19  ;;  %1387 = vmatpush.msra.mxu0 %v1289_v18  ;;  %v3730_v18 = vld [vmem:[#allocation9 + $0x268] ss:$0 sm:$0xff] }
 0x188   : > { %1447 = vmatpush.msra.mxu3 %v1337_v21  ;;  %1428 = vmatpush.msra.mxu2 %v1320_v25 }
 0x189   : > { %1407 = vmatpush.msra.mxu1 %v1305_v22  ;;  %1388 = vmatpush.msra.mxu0 %v1288_v26 }
 0x18a   : > { %1429 = vmatmul.f32.vlgmr.msra.gmra.mxu2 %v1286_v27  ;;  %1448 = vmatpush.msra.mxu3 %v1336_v28 }
 0x18b   : > { %1389 = vmatmul.f32.vlgmr.msra.gmra.mxu0 %v1284_v29  ;;  %1449 = vmatmul.f32.vlgmr.msra.gmra.mxu3 %v1287_v30 }
 0x18c   : > { %1469 = vmatpush.msrb.mxu0 %v3692_v31  ;;  %1408 = vmatpush.msra.mxu1 %v1304_v32 }
 0x18d   : > { %1409 = vmatmul.f32.vlgmr.msra.gmra.mxu1 %v1285_v33  ;;  %1611 = vmatpush.msrb.mxu3 %v3692_v31 }
 0x18e   : > { %1470 = vmatpush.msrb.mxu0 %v3694_v15  ;;  %1553 = vmatpush.msrb.mxu2 %v1364_v4 }
 0x18f   : > { %1612 = vmatpush.msrb.mxu3 %v3694_v15  ;;  %1533 = vmatpush.msrb.mxu1 %v1360_v6 }
 0x190   : > { %1471 = vmatpush.msrb.mxu0 %v3697_v34  ;;  %1554 = vmatpush.msrb.mxu2 %v1363_v5 }
 0x191   : > { %1613 = vmatpush.msrb.mxu3 %v3697_v34  ;;  %1534 = vmatpush.msrb.mxu1 %v1359_v7 }
 0x192   : > { %1472 = vmatpush.msrb.mxu0 %v3701_v16  ;;  %1555 = vmatpush.msrb.mxu2 %v1362_v8 }
 0x193   : > { %1473 = vmatmul.f32.vlgmr.msrb.gmra.mxu0 %v3267_v35  ;;  %1614 = vmatpush.msrb.mxu3 %v3701_v16 }
 0x194   : > { %1681 = vmatpush.msra.mxu0 %v1360_v6  ;;  %1535 = vmatpush.msrb.mxu1 %v1358_v9 }
 0x195   : > { %1834 = vmatpush.msra.mxu3 %v1360_v6  ;;  %1556 = vmatpush.msrb.mxu2 %v1361_v10 }
 0x196   : > { %1682 = vmatpush.msra.mxu0 %v1359_v7  ;;  %1536 = vmatpush.msrb.mxu1 %v1357_v11 }
 0x197   : > { %1835 = vmatpush.msra.mxu3 %v1359_v7  ;;  %1557 = vmatmul.f32.vlgmr.msrb.gmra.mxu2 %v3267_v35 }
 0x198   : > { %1683 = vmatpush.msra.mxu0 %v1358_v9  ;;  %1764 = vmatpush.msra.mxu2 %v3692_v31 }
 0x199   : > { %1836 = vmatpush.msra.mxu3 %v1358_v9  ;;  %1706 = vmatpush.msra.mxu1 %v1364_v4 }
 0x19a   : > { %1684 = vmatpush.msra.mxu0 %v1357_v11  ;;  %1765 = vmatpush.msra.mxu2 %v3694_v15 }
 0x19b   : > { %1837 = vmatpush.msra.mxu3 %v1357_v11  ;;  %1707 = vmatpush.msra.mxu1 %v1363_v5 }
 0x19c   : > { %1859 = vmatpush.msrb.mxu0 %v1364_v4  ;;  %1766 = vmatpush.msra.mxu2 %v3697_v34 }
 0x19d   : > { %1708 = vmatpush.msra.mxu1 %v1362_v8 }
 0x19e   : > { %1860 = vmatpush.msrb.mxu0 %v1363_v5  ;;  %1767 = vmatpush.msra.mxu2 %v3701_v16 }
 0x19f   : > { %1709 = vmatpush.msra.mxu1 %v1361_v10 }
 0x1a0   : > { %1861 = vmatpush.msrb.mxu0 %v1362_v8  ;;  %1987 = vmatpush.msrb.mxu2 %v1360_v6 }
 0x1a2   : > { %1862 = vmatpush.msrb.mxu0 %v1361_v10  ;;  %1988 = vmatpush.msrb.mxu2 %v1359_v7 }
 0x1a4   : > { %1989 = vmatpush.msrb.mxu2 %v1358_v9 }
 0x1a6   : > { %1990 = vmatpush.msrb.mxu2 %v1357_v11 }
 0x208   : > { %v1390_v37 = vpop.f32.mrf.mxu0 }
 0x209   : > { %v1391_v38 = vadd.f32 %v3016_v36, %v1390_v37 }
 0x20a   : > { %v1410_v39 = vpop.f32.mrf.mxu1 }
 0x20b   : > { %v1411_v40 = vadd.f32 %v1410_v39, %v1391_v38 }
 0x20d   : > { %v1430_v41 = vpop.f32.mrf.mxu2 }
 0x20e   : > { %v1431_v42 = vadd.f32 %v1430_v41, %v1411_v40  ;;  %v1450_v43 = vpop.f32.mrf.mxu3 }
 0x210   : > { %v3709_v44 = vadd.f32 %v1450_v43, %v1431_v42  ;;  %v1474_v45 = vpop.f32.mrf.mxu0 }
 0x212   : > { %v1477_v46 = vadd.f32 %v1474_v45, %v3709_v44 }
 0x214   : > { %3020 = vtanh.f32 %v1477_v46  ;;  %v2790_v48 = vmul.f32 -1.442695, %v1477_v46 }
 0x216   : > { %3022 = vpow2.f32 %v2790_v48 }
 0x21a   : > { %v3021_v47 = vpop.eup %3020  ;;  %v1558_v22 = vpop.f32.mrf.mxu2 }
 0x21b   : > { %1500 = vrot.lane.b32.xlu0 %v3021_v47, %s3268_s20 }
 0x21c   : > { %v3023_v49 = vpop.eup %3022 }
 0x21d   : > { %v1481_v50 = vadd.f32 1.0, %v3023_v49 }
 0x21f   : > { %3024 = vrcp.f32 %v1481_v50  ;;  %v1493_v56 = vand.u32 2147483648, %v1481_v50  ;;  %vm1487_vm1 = vweird.f32 %v1481_v50  ;;  %v1491_v57 = vand.u32 2147483647, %v1481_v50 }
 0x221   : > { %v1494_v59 = vor.u32 1.1754944e-38, %v1493_v56  ;;  %vm1492_vm3 = vcmp.eq.f32.partialorder %v1491_v57, 8.507059e+37 }
 0x225   : > { %v3025_v51 = vpop.eup %3024 }
 0x226   : > { %v1483_v52 = vmul.f32 %v3025_v51, %v1481_v50  ;;  %vm1488_vm0 = vweird.f32 %v3025_v51 }
 0x227   : > { %vm1489_vm2 = vmor %vm1487_vm1, %vm1488_vm0 }
 0x228   : > { %v1484_v53 = vsub.f32 1.0, %v1483_v52 }
 0x22a   : > { %v1485_v54 = vmul.f32 %v3025_v51, %v1484_v53 }
 0x22c   : > { %v1486_v55 = vadd.f32 %v3025_v51, %v1485_v54 }
 0x22e   : > { %v1490_v58 = vsel %vm1489_vm2, %v3025_v51, %v1486_v55 }
 0x22f   : > { %v1495_v61 = vsel %vm1492_vm3, %v1494_v59, %v1490_v58 }
 0x230   : > { %v1498_v63 = vmul.f32 0.0, %v1495_v61 }
 0x28d   : > { %v1501_v60 = vpop.permute.xlu0 %1500 }
 0x28e   : > { %v1503_v62 = vmul.f32 %v1501_v60, %v1495_v61 }
 0x290   : > { %1505 = vrot.lane.b32.xlu0 %v1503_v62, %s3269_s29 }
 0x302   : > { %v1506_v0 = vpop.permute.xlu0 %1505 }
 0x303   : > { %v3714_v2 = vadd.f32 %v1506_v0, %v1498_v63 }
 0x305   : > { %3026 = vtanh.f32 %v3714_v2  ;;  %v1644_v55 = vrot.slane %v3714_v2, 6 }
 0x30b   : > { %v3027_v3 = vpop.eup %3026 }
 0x30c   : > { %1511 = vrot.lane.b32.xlu1 %v3027_v3, %s3268_s20 }
 0x37e   : > { %v1512_v12 = vpop.permute.xlu1 %1511 }
 0x37f   : > { %v1514_v13 = vmul.f32 %v1512_v12, %v1495_v61 }
 0x381   : > { %1517 = vrot.lane.b32.xlu1 %v1514_v13, %s3269_s29 }
 0x3f3   : > { %v1518_v14 = vpop.permute.xlu1 %1517 }
 0x3f4   : > { %2791 = vmatmul.msk.f32.vlgmr.msrb.gmra.mxu1 %vm1453_vm4, %v1518_v14  ;;  %2793 = vmatmul.msk.f32.vlgmr.msrb.gmra.mxu3 %vm1453_vm4, %v1518_v14 }
 0x3f5   : > { %1917 = vmatpush.msrb.mxu1 %v3692_v31  ;;  %2012 = vmatpush.msrb.mxu3 %v1364_v4 }
 0x3f7   : > { %1918 = vmatpush.msrb.mxu1 %v3694_v15  ;;  %2013 = vmatpush.msrb.mxu3 %v1363_v5 }
 0x3f9   : > { %1919 = vmatpush.msrb.mxu1 %v3697_v34  ;;  %2014 = vmatpush.msrb.mxu3 %v1362_v8 }
 0x3fb   : > { %1920 = vmatpush.msrb.mxu1 %v3701_v16  ;;  %2015 = vmatpush.msrb.mxu3 %v1361_v10 }
 0x471   : > { %v1538_v20 = vpop.f32.mrf.mxu1 }
 0x472   : > { %v1539_v21 = vadd.f32 %v3730_v18, %v1538_v20 }
 0x474   : > { %v1561_v23 = vadd.f32 %v1558_v22, %v1539_v21 }
 0x476   : > { %v2792_v27 = vmul.f32 -1.442695, %v1561_v23 }
 0x477   : > { %v1616_v17 = vpop.f32.mrf.mxu3 }
 0x478   : > { %v1620_v19 = vrot.slane %v1616_v17, 6 }
 0x47a   : > { %v1622_v1 = vadd.f32 %v1620_v19, %v3709_v44 }
 0x47c   : > { %3028 = vtanh.f32 %v1622_v1  ;;  %v2794_v26 = vmul.f32 -1.442695, %v1622_v1 }
 0x47d   : > { %3030 = vtanh.f32 %v1561_v23 }
 0x47e   : > { %3032 = vpow2.f32 %v2794_v26 }
 0x47f   : > { %3034 = vpow2.f32 %v2792_v27 }
 0x482   : > { %v3029_v24 = vpop.eup %3028 }
 0x483   : > { %1648 = vrot.lane.b32.xlu2 %v3029_v24, %s3268_s20  ;;  %v3031_v25 = vpop.eup %3030 }
 0x484   : > { %v3033_v28 = vpop.eup %3032 }
 0x485   : > { %v1626_v29 = vadd.f32 1.0, %v3033_v28  ;;  %v3035_v30 = vpop.eup %3034 }
 0x486   : > { %v1565_v31 = vadd.f32 1.0, %v3035_v30 }
 0x487   : > { %3036 = vrcp.f32 %v1626_v29  ;;  %v1638_v38 = vand.u32 2147483648, %v1626_v29  ;;  %vm1632_vm6 = vweird.f32 %v1626_v29  ;;  %v1636_v39 = vand.u32 2147483647, %v1626_v29 }
 0x488   : > { %3038 = vrcp.f32 %v1565_v31  ;;  %v1577_v48 = vand.u32 2147483648, %v1565_v31  ;;  %vm1571_vm10 = vweird.f32 %v1565_v31  ;;  %v1575_v49 = vand.u32 2147483647, %v1565_v31 }
 0x489   : > { %v1639_v42 = vor.u32 1.1754944e-38, %v1638_v38  ;;  %vm1637_vm8 = vcmp.eq.f32.partialorder %v1636_v39, 8.507059e+37 }
 0x48a   : > { %v1578_v51 = vor.u32 1.1754944e-38, %v1577_v48  ;;  %vm1576_vm12 = vcmp.eq.f32.partialorder %v1575_v49, 8.507059e+37 }
 0x48b   : > { %1584 = vrot.lane.b32.xlu2 %v3031_v25, %s3268_s20 }
 0x48d   : > { %v3037_v32 = vpop.eup %3036 }
 0x48e   : > { %v1628_v33 = vmul.f32 %v3037_v32, %v1626_v29  ;;  %v3039_v34 = vpop.eup %3038  ;;  %vm1633_vm5 = vweird.f32 %v3037_v32 }
 0x48f   : > { %v1567_v35 = vmul.f32 %v3039_v34, %v1565_v31  ;;  %vm1634_vm7 = vmor %vm1632_vm6, %vm1633_vm5  ;;  %vm1572_vm9 = vweird.f32 %v3039_v34 }
 0x490   : > { %v1629_v15 = vsub.f32 1.0, %v1628_v33  ;;  %vm1573_vm11 = vmor %vm1571_vm10, %vm1572_vm9 }
 0x491   : > { %v1568_v37 = vsub.f32 1.0, %v1567_v35 }
 0x492   : > { %v1630_v16 = vmul.f32 %v3037_v32, %v1629_v15 }
 0x493   : > { %v1569_v41 = vmul.f32 %v3039_v34, %v1568_v37 }
 0x494   : > { %v1631_v36 = vadd.f32 %v3037_v32, %v1630_v16 }
 0x495   : > { %v1570_v47 = vadd.f32 %v3039_v34, %v1569_v41 }
 0x496   : > { %v1635_v40 = vsel %vm1634_vm7, %v3037_v32, %v1631_v36 }
 0x497   : > { %v1640_v45 = vsel %vm1637_vm8, %v1639_v42, %v1635_v40  ;;  %v1574_v50 = vsel %vm1573_vm11, %v3039_v34, %v1570_v47 }
 0x498   : > { %v1579_v53 = vsel %vm1576_vm12, %v1578_v51, %v1574_v50  ;;  %v1646_v56 = vmul.f32 %v1644_v55, %v1640_v45 }
 0x499   : > { %v1582_v59 = vmul.f32 0.0, %v1579_v53 }
 0x4dd   : > { %v1649_v43 = vpop.permute.xlu2 %1648 }
 0x4de   : > { %v1651_v46 = vmul.f32 %v1649_v43, %v1640_v45 }
 0x4e0   : > { %1653 = vrot.lane.b32.xlu0 %v1651_v46, %s3269_s29 }
 0x4e5   : > { %v1585_v52 = vpop.permute.xlu2 %1584 }
 0x4e6   : > { %v1587_v54 = vmul.f32 %v1585_v52, %v1579_v53 }
 0x4e8   : > { %1589 = vrot.lane.b32.xlu1 %v1587_v54, %s3269_s29 }
 0x552   : > { %v1654_v57 = vpop.permute.xlu0 %1653 }
 0x553   : > { %v3739_v58 = vadd.f32 %v1654_v57, %v1646_v56 }
 0x555   : > { %3040 = vtanh.f32 %v3739_v58  ;;  %v1797_v48 = vrot.slane %v3739_v58, 6 }
 0x55a   : > { %v1590_v60 = vpop.permute.xlu1 %1589 }
 0x55b   : > { %v3041_v61 = vpop.eup %3040  ;;  %v3742_v62 = vadd.f32 %v1590_v60, %v1582_v59 }
 0x55c   : > { %1659 = vrot.lane.b32.xlu2 %v3041_v61, %s3268_s20 }
 0x55d   : > { %3042 = vtanh.f32 %v3742_v62 }
 0x563   : > { %v3043_v63 = vpop.eup %3042 }
 0x564   : > { %1595 = vrot.lane.b32.xlu0 %v3043_v63, %s3268_s20 }
 0x5b6   : > { %v1660_v0 = vpop.permute.xlu2 %1659 }
 0x5b7   : > { %v1662_v2 = vmul.f32 %v1660_v0, %v1640_v45 }
 0x5b9   : > { %v1664_v3 = vrot.slane %v1662_v2, 2 }
 0x5bb   : > { %1665 = vrot.lane.b32.xlu1 %v1664_v3, %s3269_s29 }
 0x5d6   : > { %v1596_v4 = vpop.permute.xlu0 %1595 }
 0x5d7   : > { %v3748_v5 = vmul.f32 %v1596_v4, %v1579_v53 }
 0x5d9   : > { %1690 = vrot.lane.b32.xlu2 %v3748_v5, %s3269_s29 }
 0x62d   : > { %v1666_v6 = vpop.permute.xlu1 %1665 }
 0x62e   : > { %2795 = vmatmul.msk.f32.vlgmr.msra.gmra.mxu0 %vm1453_vm4, %v1666_v6  ;;  %2798 = vmatmul.msk.f32.vlgmr.msra.gmra.mxu2 %vm1453_vm4, %v1666_v6 }
 0x633   : > { %v1691_v7 = vpop.permute.xlu2 %1690 }
 0x634   : > { %2796 = vmatmul.msk.f32.vlgmr.msra.gmra.mxu1 %vm1453_vm4, %v1691_v7 }
 0x6ab   : > { %v1686_v8 = vpop.f32.mrf.mxu0 }
 0x6ac   : > { %v1687_v9 = vadd.f32 %v3730_v18, %v1686_v8 }
 0x6b1   : > { %v1711_v10 = vpop.f32.mrf.mxu1  ;;  %v1769_v11 = vpop.f32.mrf.mxu2 }
 0x6b2   : > { %v1714_v12 = vadd.f32 %v1711_v10, %v1687_v9  ;;  %v1773_v13 = vrot.slane %v1769_v11, 4 }
 0x6b4   : > { %3044 = vtanh.f32 %v1714_v12  ;;  %v1775_v14 = vadd.f32 %v1773_v13, %v3709_v44  ;;  %v2797_v20 = vmul.f32 -1.442695, %v1714_v12 }
 0x6b6   : > { %3046 = vtanh.f32 %v1775_v14  ;;  %v2799_v1 = vmul.f32 -1.442695, %v1775_v14 }
 0x6b7   : > { %3048 = vpow2.f32 %v2797_v20 }
 0x6b8   : > { %3050 = vpow2.f32 %v2799_v1 }
 0x6ba   : > { %v3045_v17 = vpop.eup %3044 }
 0x6bb   : > { %1737 = vrot.lane.b32.xlu1 %v3045_v17, %s3268_s20 }
 0x6bc   : > { %v3047_v19 = vpop.eup %3046 }
 0x6bd   : > { %1801 = vrot.lane.b32.xlu0 %v3047_v19, %s3268_s20  ;;  %v3049_v21 = vpop.eup %3048 }
 0x6be   : > { %v3051_v22 = vpop.eup %3050  ;;  %v1718_v23 = vadd.f32 1.0, %v3049_v21 }
 0x6bf   : > { %v1779_v24 = vadd.f32 1.0, %v3051_v22 }
 0x6c0   : > { %3052 = vrcp.f32 %v1718_v23  ;;  %v1730_v15 = vand.u32 2147483648, %v1718_v23  ;;  %vm1724_vm14 = vweird.f32 %v1718_v23  ;;  %v1728_v34 = vand.u32 2147483647, %v1718_v23 }
 0x6c1   : > { %3054 = vrcp.f32 %v1779_v24  ;;  %v1791_v36 = vand.u32 2147483648, %v1779_v24  ;;  %vm1785_vm1 = vweird.f32 %v1779_v24  ;;  %v1789_v38 = vand.u32 2147483647, %v1779_v24 }
 0x6c2   : > { %v1731_v37 = vor.u32 1.1754944e-38, %v1730_v15  ;;  %vm1729_vm2 = vcmp.eq.f32.partialorder %v1728_v34, 8.507059e+37 }
 0x6c3   : > { %v1792_v43 = vor.u32 1.1754944e-38, %v1791_v36  ;;  %vm1790_vm5 = vcmp.eq.f32.partialorder %v1789_v38, 8.507059e+37 }
 0x6c6   : > { %v3053_v25 = vpop.eup %3052 }
 0x6c7   : > { %v3055_v26 = vpop.eup %3054  ;;  %v1720_v27 = vmul.f32 %v3053_v25, %v1718_v23  ;;  %vm1725_vm13 = vweird.f32 %v3053_v25 }
 0x6c8   : > { %v1781_v28 = vmul.f32 %v3055_v26, %v1779_v24  ;;  %vm1726_vm15 = vmor %vm1724_vm14, %vm1725_vm13  ;;  %vm1786_vm0 = vweird.f32 %v3055_v26 }
 0x6c9   : > { %v1721_v29 = vsub.f32 1.0, %v1720_v27  ;;  %vm1787_vm3 = vmor %vm1785_vm1, %vm1786_vm0 }
 0x6ca   : > { %v1782_v30 = vsub.f32 1.0, %v1781_v28 }
 0x6cb   : > { %v1722_v31 = vmul.f32 %v3053_v25, %v1721_v29 }
 0x6cc   : > { %v1783_v32 = vmul.f32 %v3055_v26, %v1782_v30 }
 0x6cd   : > { %v1723_v33 = vadd.f32 %v3053_v25, %v1722_v31 }
 0x6ce   : > { %v1784_v16 = vadd.f32 %v3055_v26, %v1783_v32 }
 0x6cf   : > { %v1727_v35 = vsel %vm1726_vm15, %v3053_v25, %v1723_v33 }
 0x6d0   : > { %v1732_v40 = vsel %vm1729_vm2, %v1731_v37, %v1727_v35  ;;  %v1788_v41 = vsel %vm1787_vm3, %v3055_v26, %v1784_v16  ;;  %vm2068_vm2 = vcmask 254976  }
 0x6d1   : > { %v1793_v45 = vsel %vm1790_vm5, %v1792_v43, %v1788_v41  ;;  %v1735_v53 = vmul.f32 %v1732_v40, %v3742_v62 }
 0x6d2   : > { %v1799_v49 = vmul.f32 %v1797_v48, %v1793_v45 }
 0x72d   : > { %v1738_v39 = vpop.permute.xlu1 %1737 }
 0x72e   : > { %v1740_v42 = vmul.f32 %v1738_v39, %v1732_v40 }
 0x72f   : > { %v1802_v46 = vpop.permute.xlu0 %1801 }
 0x730   : > { %1742 = vrot.lane.b32.xlu0 %v1740_v42, %s3269_s29  ;;  %v1804_v47 = vmul.f32 %v1802_v46, %v1793_v45 }
 0x732   : > { %1806 = vrot.lane.b32.xlu2 %v1804_v47, %s3269_s29 }
 0x78c   : > { %v1807_v50 = vpop.permute.xlu2 %1806 }
 0x78d   : > { %v3762_v51 = vadd.f32 %v1807_v50, %v1799_v49 }
 0x78f   : > { %3056 = vtanh.f32 %v3762_v51 }
 0x795   : > { %v3057_v52 = vpop.eup %3056 }
 0x796   : > { %1812 = vrot.lane.b32.xlu1 %v3057_v52, %s3268_s20 }
 0x7a2   : > { %v1743_v54 = vpop.permute.xlu0 %1742 }
 0x7a3   : > { %v3767_v55 = vadd.f32 %v1743_v54, %v1735_v53 }
 0x7a5   : > { %3058 = vtanh.f32 %v3767_v55 }
 0x7ab   : > { %v3059_v56 = vpop.eup %3058 }
 0x7ac   : > { %1748 = vrot.lane.b32.xlu2 %v3059_v56, %s3268_s20 }
 0x806   : > { %v1749_v57 = vpop.permute.xlu2 %1748 }
 0x807   : > { %v3771_v58 = vmul.f32 %v1749_v57, %v1732_v40  ;;  %v1950_v40 = vrot.slane %v3762_v51, 6 }
 0x808   : > { %v1813_v59 = vpop.permute.xlu1 %1812 }
 0x809   : > { %1843 = vrot.lane.b32.xlu1 %v3771_v58, %s3269_s29  ;;  %v1815_v60 = vmul.f32 %v1813_v59, %v1793_v45 }
 0x80b   : > { %v1817_v61 = vrot.slane %v1815_v60, 4 }
 0x80d   : > { %1818 = vrot.lane.b32.xlu0 %v1817_v61, %s3269_s29 }
 0x87b   : > { %v1844_v62 = vpop.permute.xlu1 %1843 }
 0x87c   : > { %2801 = vmatmul.msk.f32.vlgmr.msrb.gmra.mxu0 %vm1453_vm4, %v1844_v62 }
 0x87f   : > { %v1819_v63 = vpop.permute.xlu0 %1818 }
 0x880   : > { %2800 = vmatmul.msk.f32.vlgmr.msra.gmra.mxu3 %vm1453_vm4, %v1819_v63  ;;  %2803 = vmatmul.msk.f32.vlgmr.msrb.gmra.mxu1 %vm1453_vm4, %v1819_v63 }
 0x8f9   : > { %v1864_v7 = vpop.f32.mrf.mxu0 }
 0x8fd   : > { %v1922_v0 = vpop.f32.mrf.mxu1 }
 0x8fe   : > { %v1926_v2 = vrot.slane %v1922_v0, 2 }
 0x900   : > { %v1928_v3 = vadd.f32 %v1926_v2, %v3709_v44 }
 0x902   : > { %3060 = vtanh.f32 %v1928_v3  ;;  %v2804_v11 = vmul.f32 -1.442695, %v1928_v3 }
 0x903   : > { %v1839_v4 = vpop.f32.mrf.mxu3 }
 0x904   : > { %v1840_v6 = vadd.f32 %v3730_v18, %v1839_v4 }
 0x906   : > { %v1867_v8 = vadd.f32 %v1864_v7, %v1840_v6 }
 0x908   : > { %v3061_v9 = vpop.eup %3060  ;;  %3062 = vtanh.f32 %v1867_v8  ;;  %v2802_v17 = vmul.f32 -1.442695, %v1867_v8 }
 0x909   : > { %1954 = vrot.lane.b32.xlu2 %v3061_v9, %s3268_s20  ;;  %3064 = vpow2.f32 %v2804_v11 }
 0x90e   : > { %v3063_v10 = vpop.eup %3062 }
 0x90f   : > { %1890 = vrot.lane.b32.xlu0 %v3063_v10, %s3268_s20  ;;  %v3065_v12 = vpop.eup %3064 }
 0x910   : > { %v1932_v13 = vadd.f32 1.0, %v3065_v12 }
 0x912   : > { %3066 = vrcp.f32 %v1932_v13  ;;  %v1944_v21 = vand.u32 2147483648, %v1932_v13  ;;  %vm1938_vm7 = vweird.f32 %v1932_v13  ;;  %v1942_v23 = vand.u32 2147483647, %v1932_v13 }
 0x913   : > { %3068 = vpow2.f32 %v2802_v17 }
 0x914   : > { %v1945_v26 = vor.u32 1.1754944e-38, %v1944_v21  ;;  %vm1943_vm9 = vcmp.eq.f32.partialorder %v1942_v23, 8.507059e+37 }
 0x918   : > { %v3067_v14 = vpop.eup %3066 }
 0x919   : > { %v1934_v44 = vmul.f32 %v3067_v14, %v1932_v13  ;;  %vm1939_vm6 = vweird.f32 %v3067_v14  ;;  %v3069_v22 = vpop.eup %3068 }
 0x91a   : > { %vm1940_vm8 = vmor %vm1938_vm7, %vm1939_vm6  ;;  %v1871_v25 = vadd.f32 1.0, %v3069_v22 }
 0x91b   : > { %v1935_v19 = vsub.f32 1.0, %v1934_v44 }
 0x91c   : > { %3070 = vrcp.f32 %v1871_v25  ;;  %v1883_v34 = vand.u32 2147483648, %v1871_v25  ;;  %vm1877_vm11 = vweird.f32 %v1871_v25  ;;  %v1881_v16 = vand.u32 2147483647, %v1871_v25 }
 0x91d   : > { %v1936_v20 = vmul.f32 %v3067_v14, %v1935_v19 }
 0x91e   : > { %v1884_v36 = vor.u32 1.1754944e-38, %v1883_v34  ;;  %vm1882_vm13 = vcmp.eq.f32.partialorder %v1881_v16, 8.507059e+37 }
 0x91f   : > { %v1937_v1 = vadd.f32 %v3067_v14, %v1936_v20 }
 0x921   : > { %v1941_v24 = vsel %vm1940_vm8, %v3067_v14, %v1937_v1  ;;  %vm2141_vm8 = vcmask 1041408  }
 0x922   : > { %v1946_v28 = vsel %vm1943_vm9, %v1945_v26, %v1941_v24  ;;  %v3071_v30 = vpop.eup %3070 }
 0x923   : > { %v1873_v31 = vmul.f32 %v3071_v30, %v1871_v25  ;;  %vm1878_vm10 = vweird.f32 %v3071_v30  ;;  %v1952_v41 = vmul.f32 %v1950_v40, %v1946_v28 }
 0x924   : > { %vm1879_vm12 = vmor %vm1877_vm11, %vm1878_vm10 }
 0x925   : > { %v1874_v32 = vsub.f32 1.0, %v1873_v31 }
 0x927   : > { %v1875_v33 = vmul.f32 %v3071_v30, %v1874_v32 }
 0x929   : > { %v1876_v15 = vadd.f32 %v3071_v30, %v1875_v33 }
 0x92b   : > { %v1880_v35 = vsel %vm1879_vm12, %v3071_v30, %v1876_v15 }
 0x92c   : > { %v1885_v38 = vsel %vm1882_vm13, %v1884_v36, %v1880_v35 }
 0x92d   : > { %v1888_v45 = vmul.f32 %v1885_v38, %v3767_v55  ;;  %v3018_v55 = vld [vmem:[#allocation9 + $0x270] ss:$0 sm:$0xff] }
 0x963   : > { %v1955_v27 = vpop.permute.xlu2 %1954 }
 0x964   : > { %v1957_v29 = vmul.f32 %v1955_v27, %v1946_v28 }
 0x966   : > { %1959 = vrot.lane.b32.xlu1 %v1957_v29, %s3269_s29 }
 0x981   : > { %v1891_v37 = vpop.permute.xlu0 %1890 }
 0x982   : > { %v1893_v39 = vmul.f32 %v1891_v37, %v1885_v38 }
 0x984   : > { %1895 = vrot.lane.b32.xlu2 %v1893_v39, %s3269_s29 }
 0x9d8   : > { %v1960_v42 = vpop.permute.xlu1 %1959 }
 0x9d9   : > { %v1962_v43 = vadd.f32 %v1960_v42, %v1952_v41 }
 0x9db   : > { %3072 = vtanh.f32 %v1962_v43 }
 0x9de   : > { %v1896_v46 = vpop.permute.xlu2 %1895 }
 0x9df   : > { %v1898_v47 = vadd.f32 %v1896_v46, %v1888_v45 }
 0x9e1   : > { %v3073_v48 = vpop.eup %3072  ;;  %3074 = vtanh.f32 %v1898_v47 }
 0x9e2   : > { %1965 = vrot.lane.b32.xlu0 %v3073_v48, %s3268_s20 }
 0x9e7   : > { %v3075_v49 = vpop.eup %3074 }
 0x9e8   : > { %1901 = vrot.lane.b32.xlu1 %v3075_v49, %s3268_s20 }
 0xa54   : > { %v1966_v50 = vpop.permute.xlu0 %1965 }
 0xa55   : > { %v1968_v52 = vmul.f32 %v1966_v50, %v1946_v28 }
 0xa57   : > { %v1970_v53 = vrot.slane %v1968_v52, 6 }
 0xa59   : > { %1971 = vrot.lane.b32.xlu2 %v1970_v53, %s3269_s29 }
 0xa5a   : > { %v1902_v51 = vpop.permute.xlu1 %1901 }
 0xa5b   : > { %v3790_v54 = vmul.f32 %v1902_v51, %v1885_v38 }
 0xa5d   : > { %1996 = vrot.lane.b32.xlu0 %v3790_v54, %s3269_s29 }
 0xa65   : > { %2060 = vrot.lane.b32.xlu0 %v3018_v55, %s3270_s9 }
 0xab3   : > { %v1972_v56 = vpop.permute.xlu2 %1971 }
 0xab4   : > { %2805 = vmatmul.msk.f32.vlgmr.msrb.gmra.mxu2 %vm1453_vm4, %v1972_v56  ;;  %v1370_v56 = vld [vmem:[#allocation9 + $0x290] sm:$0xff] }
 0xab5   : > { %2161 = vmatpush.msra.mxu0 %v1370_v56 }
 0xacf   : > { %v1997_v57 = vpop.permute.xlu0 %1996 }
 0xad0   : > { %2806 = vmatmul.msk.f32.vlgmr.msrb.gmra.mxu3 %vm1453_vm4, %v1997_v57  ;;  %v1369_v57 = vld [vmem:[#allocation9 + $0x288] sm:$0xff] }
 0xad1   : > { %2162 = vmatpush.msra.mxu0 %v1369_v57 }
 0xad7   : > { %v2061_v59 = vpop.permute.xlu0 %2060 }
 0xad8   : > { %v2072_v60 = vmul.f32 %v2061_v59, %v3771_v58  ;;  %v2063_v20 = vmul.f32 %v2061_v59, %v3748_v5  ;;  %v2080_v26 = vmul.f32 %v2061_v59, %v3790_v54 }
 0xada   : > { %2074 = vrot.lane.b32.xlu0 %v2072_v60, %s3269_s29 }
 0xb37   : > { %v1992_v61 = vpop.f32.mrf.mxu2 }
 0xb38   : > { %v1993_v62 = vadd.f32 %v3730_v18, %v1992_v61  ;;  %v1368_v61 = vld [vmem:[#allocation9 + $0x280] sm:$0xff] }
 0xb39   : > { %2163 = vmatpush.msra.mxu0 %v1368_v61 }
 0xb4c   : > { %v2075_v27 = vpop.permute.xlu0 %2074 }
 0xb4d   : > { %v2077_v28 = vsel %vm2068_vm2, %v2075_v27, 0.0 }
 0xb53   : > { %v2017_v63 = vpop.f32.mrf.mxu3 }
 0xb54   : > { %v2020_v0 = vadd.f32 %v2017_v63, %v1993_v62  ;;  %v1367_v62 = vld [vmem:[#allocation9 + $0x278] sm:$0xff] }
 0xb55   : > { %2164 = vmatpush.msra.mxu0 %v1367_v62 }
 0xb56   : > { %3076 = vtanh.f32 %v2020_v0  ;;  %v2807_v3 = vmul.f32 -1.442695, %v2020_v0 }
 0xb58   : > { %3078 = vpow2.f32 %v2807_v3 }
 0xb5c   : > { %v3077_v2 = vpop.eup %3076 }
 0xb5d   : > { %2043 = vrot.lane.b32.xlu1 %v3077_v2, %s3268_s20 }
 0xb5e   : > { %v3079_v4 = vpop.eup %3078 }
 0xb5f   : > { %v2024_v6 = vadd.f32 1.0, %v3079_v4 }
 0xb61   : > { %3080 = vrcp.f32 %v2024_v6  ;;  %v2036_v12 = vand.u32 2147483648, %v2024_v6  ;;  %vm2030_vm15 = vweird.f32 %v2024_v6  ;;  %v2034_v18 = vand.u32 2147483647, %v2024_v6 }
 0xb63   : > { %v2037_v14 = vor.u32 1.1754944e-38, %v2036_v12  ;;  %vm2035_vm1 = vcmp.eq.f32.partialorder %v2034_v18, 8.507059e+37 }
 0xb67   : > { %v3081_v7 = vpop.eup %3080 }
 0xb68   : > { %v2026_v8 = vmul.f32 %v3081_v7, %v2024_v6  ;;  %vm2031_vm14 = vweird.f32 %v3081_v7 }
 0xb69   : > { %vm2032_vm0 = vmor %vm2030_vm15, %vm2031_vm14 }
 0xb6a   : > { %v2027_v9 = vsub.f32 1.0, %v2026_v8 }
 0xb6c   : > { %v2028_v10 = vmul.f32 %v3081_v7, %v2027_v9 }
 0xb6e   : > { %v2029_v11 = vadd.f32 %v3081_v7, %v2028_v10 }
 0xb70   : > { %v2033_v13 = vsel %vm2032_vm0, %v3081_v7, %v2029_v11 }
 0xb71   : > { %v2038_v17 = vsel %vm2035_vm1, %v2037_v14, %v2033_v13 }
 0xb72   : > { %v2041_v1 = vmul.f32 %v2038_v17, %v1898_v47 }
 0xbcf   : > { %v2044_v44 = vpop.permute.xlu1 %2043 }
 0xbd0   : > { %v2046_v19 = vmul.f32 %v2044_v44, %v2038_v17 }
 0xbd2   : > { %2048 = vrot.lane.b32.xlu2 %v2046_v19, %s3269_s29 }
 0xbda   : > { %2065 = vrot.lane.b32.xlu2 %v2063_v20, %s3269_s29 }
 0xc2c   : > { %v2049_v21 = vpop.permute.xlu2 %2048 }
 0xc2d   : > { %v2051_v22 = vadd.f32 %v2049_v21, %v2041_v1 }
 0xc2f   : > { %3082 = vtanh.f32 %v2051_v22 }
 0xc34   : > { %v2066_v23 = vpop.permute.xlu2 %2065 }
 0xc35   : > { %v3083_v24 = vpop.eup %3082  ;;  %v2069_v25 = vsel %vm2068_vm2, %v2066_v23, 0.0 }
 0xc36   : > { %2054 = vrot.lane.b32.xlu1 %v3083_v24, %s3268_s20  ;;  %2070 = vadd.xlane.f32.xlu0 %v2069_v25  ;;  %v3019_v24 = vld [vmem:[#allocation9 + $0x298] ss:$0 sm:$0xff] }
 0xc3e   : > { %2082 = vrot.lane.b32.xlu1 %v2080_v26, %s3269_s29 }
 0xc68   : > { %2078 = vadd.xlane.f32.xlu1 %v2077_v28 }
 0xca8   : > { %v2055_v29 = vpop.permute.xlu1 %2054 }
 0xca9   : > { %v3808_v30 = vmul.f32 %v2055_v29, %v2038_v17  ;;  %v2071_v36 = vpop.xlane.xlu0 %2070 }
 0xcab   : > { %v2088_v31 = vmul.f32 %v2061_v59, %v3808_v30 }
 0xcad   : > { %2090 = vrot.lane.b32.xlu2 %v2088_v31, %s3269_s29 }
 0xcb0   : > { %v2083_v32 = vpop.permute.xlu1 %2082 }
 0xcb1   : > { %v2085_v33 = vsel %vm2068_vm2, %v2083_v32, 0.0 }
 0xcd6   : > { %2086 = vadd.xlane.f32.xlu2 %v2085_v33 }
 0xcdb   : > { %v2079_v35 = vpop.xlane.xlu1 %2078 }
 0xcdc   : > { %v2096_v37 = vmax.f32 %v2071_v36, %v2079_v35 }
 0xd07   : > { %v2091_v15 = vpop.permute.xlu2 %2090 }
 0xd08   : > { %v2093_v34 = vsel %vm2068_vm2, %v2091_v15, 0.0 }
 0xd09   : > { %2094 = vadd.xlane.f32.xlu2 %v2093_v34 }
 0xd49   : > { %v2087_v16 = vpop.xlane.xlu2 %2086 }
 0xd4a   : > { %v2097_v38 = vmax.f32 %v2096_v37, %v2087_v16 }
 0xd7c   : > { %v2095_v39 = vpop.xlane.xlu2 %2094 }
 0xd7d   : > { %v2098_v40 = vmax.f32 %v2097_v38, %v2095_v39 }
 0xd7f   : > { %v2099_v41 = vsub.f32 %v2071_v36, %v2098_v40  ;;  %v2102_v42 = vsub.f32 %v2079_v35, %v2098_v40  ;;  %v2105_v43 = vsub.f32 %v2087_v16, %v2098_v40  ;;  %v2108_v45 = vsub.f32 %v2095_v39, %v2098_v40 }
 0xd81   : > { %v2100_v46 = vmul.f32 1.442695, %v2099_v41  ;;  %v2103_v47 = vmul.f32 1.442695, %v2102_v42  ;;  %v2106_v48 = vmul.f32 1.442695, %v2105_v43 }
 0xd82   : > { %v2109_v49 = vmul.f32 1.442695, %v2108_v45 }
 0xd83   : > { %3084 = vpow2.f32 %v2100_v46 }
 0xd84   : > { %3086 = vpow2.f32 %v2103_v47 }
 0xd85   : > { %3088 = vpow2.f32 %v2106_v48 }
 0xd86   : > { %3090 = vpow2.f32 %v2109_v49 }
 0xd89   : > { %v3085_v50 = vpop.eup %3084 }
 0xd8a   : > { %v3087_v52 = vpop.eup %3086 }
 0xd8b   : > { %v2111_v53 = vadd.f32 %v3087_v52, %v3085_v50  ;;  %v3089_v51 = vpop.eup %3088 }
 0xd8c   : > { %v3091_v59 = vpop.eup %3090 }
 0xd8d   : > { %v2112_v55 = vadd.f32 %v3089_v51, %v2111_v53 }
 0xd8f   : > { %v2113_v60 = vadd.f32 %v3091_v59, %v2112_v55 }
 0xd91   : > { %3092 = vrcp.f32 %v2113_v60  ;;  %v2125_v3 = vand.u32 2147483648, %v2113_v60  ;;  %v2123_v6 = vand.u32 2147483647, %v2113_v60  ;;  %vm2119_vm5 = vweird.f32 %v2113_v60 }
 0xd93   : > { %v2126_v8 = vor.u32 1.1754944e-38, %v2125_v3  ;;  %vm2124_vm7 = vcmp.eq.f32.partialorder %v2123_v6, 8.507059e+37 }
 0xd97   : > { %v3093_v63 = vpop.eup %3092 }
 0xd98   : > { %v2115_v0 = vmul.f32 %v3093_v63, %v2113_v60  ;;  %vm2120_vm3 = vweird.f32 %v3093_v63 }
 0xd99   : > { %vm2121_vm6 = vmor %vm2119_vm5, %vm2120_vm3 }
 0xd9a   : > { %v2116_v2 = vsub.f32 1.0, %v2115_v0 }
 0xd9c   : > { %v2117_v4 = vmul.f32 %v3093_v63, %v2116_v2 }
 0xd9e   : > { %v2118_v7 = vadd.f32 %v3093_v63, %v2117_v4 }
 0xda0   : > { %v2122_v9 = vsel %vm2121_vm6, %v3093_v63, %v2118_v7 }
 0xda1   : > { %v2127_v10 = vsel %vm2124_vm7, %v2126_v8, %v2122_v9 }
 0xda2   : > { %v2129_v11 = vmul.f32 %v3085_v50, %v2127_v10  ;;  %v2132_v12 = vmul.f32 %v3087_v52, %v2127_v10  ;;  %v2135_v18 = vmul.f32 %v3089_v51, %v2127_v10  ;;  %v2138_v44 = vmul.f32 %v3091_v59, %v2127_v10 }
 0xda4   : > { %v2130_v13 = vmul.f32 %v2129_v11, %v3748_v5  ;;  %v2133_v14 = vmul.f32 %v2132_v12, %v3771_v58  ;;  %v2136_v19 = vmul.f32 %v2135_v18, %v3790_v54  ;;  %v2139_v1 = vmul.f32 %v2138_v44, %v3808_v30 }
 0xda6   : > { %v2134_v17 = vadd.f32 %v2133_v14, %v2130_v13 }
 0xda8   : > { %v2137_v20 = vadd.f32 %v2136_v19, %v2134_v17 }
 0xdaa   : > { %v2140_v21 = vadd.f32 %v2139_v1, %v2137_v20 }
 0xdac   : > { %v2142_v22 = vsel %vm2141_vm8, %v2140_v21, 0.0 }
 0xdad   : > { %2145 = vrot.lane.b32.xlu0 %v2142_v22, %s3269_s29 }
 0xe1f   : > { %v2146_v23 = vpop.permute.xlu0 %2145 }
 0xe20   : > { %2808 = vmatmul.msk.f32.vlgmr.msra.gmra.mxu0 %vm1453_vm4, %v2146_v23 }
 0xe9d   : > { %v2166_v25 = vpop.f32.mrf.mxu0 }
 0xe9e   : > { %v2167_v5 = vadd.f32 %v3019_v24, %v2166_v25 }
 0xea0   : > { %2169 = vst [vmem:[#allocation10] sm:$0xff] %v2167_v5 }
 0xea1 PF: > { %p2970_p3 = scmp.eq.s32.totalorder %s3314_s19, 3  ;;  %s3271_s23 = smov [#allocation10]  }
 0xea2   : > { %s2176_s21 = sshll.u32 %s3271_s23, 4  ;;  %s2178_s10 = sshll.u32 %s3840_s3, 4  ;;  %s2177_s21 = int_to_ptr.vmem [resolvable:$true] %s2176_s21  ;;  %s2179_s10 = int_to_ptr.hbm [resolvable:$true] %s2178_s10 }
 0xea3   : > { %2953 = dma.vmem_to_hbm [thread:$0]  (%p2970_p3), %s2177_s21, 128, %s2179_s10, [#allocation6]  }
 0xea4   : > { %3241 = dma.done.wait (%p2970_p3), [#allocation6], 128  }
 0xea5   : > { %3243 = vsyncadd (%p2970_p3), [#allocation6], 4294967168 }
 0xea6 PF: > { %p17_p4 = scmp.ge.s32.totalorder %s3329_s25, 6   ;;  %s3844_s12 = smov %s3250_s13 }
 0xea7   : > { %s3845_s13 = smov %s3254_s14  ;;  %s3846_s14 = smov %s3339_s28 }
 0xea8   : > { %s3847_s15 = smov %s3329_s25  ;;  %19 = sbr.rel (!%p17_p4) target bundleno = 6 (0x6), region = 94 }
 0xead   :  { %2192 = vsyncpa [#allocation5], 1 }
 0xeae   :  { %2194 = vsyncpa [#allocation5 + $0x1], 1 }
 0xeaf   :  { %2195 = vsyncpa [#allocation8], 1 }
 0xeb0   :  { %2197 = vsyncpa [#allocation8 + $0x1], 1 }
 0xeb1   :  { %2198 = vsyncpa [#allocation6], 1 }
 0xeb2   :  { %2200 = vsyncpa [#allocation6 + $0x1], 1 }

</bundles_post_ra>
